<compile_context>
chip_gen: v7x
topology: tpu7x:2x2x1
jax: 0.10.0
libtpu: 0.0.40
codegen_flags: <defaults>
</compile_context>

<pallas_src>
import functools
import math

import jax
import jax.numpy as jnp
from jax.experimental import pallas as pl
from jax.experimental.pallas import tpu as pltpu


def _transformer_block_kernel(
    x_ref, bias_ref,
    ln1_w_ref, ln1_b_ref, ln2_w_ref, ln2_b_ref,
    wq_t_ref, bq_ref, wo_t_ref, bo_ref,
    w1_t_ref, b1_ref, w2_t_ref, b2_ref,
    out_ref, attn_ref=None,
    *, d_model,
):
    x = x_ref[...]                       # (bb, S, Dp) f32, zeros in padded lanes
    bias = bias_ref[...]                 # (bb, 1, S)  f32 additive mask bias
    bb, S, Dp = x.shape
    eps = 1e-5
    inv_d = 1.0 / d_model
    inv_sqrt_d = 1.0 / math.sqrt(d_model)
    mm = wq_t_ref.dtype                  # matmul operand dtype (bf16 default)

    # Grid-resident parameters (constant index maps) — hoisted loads.
    ln1_w, ln1_b = ln1_w_ref[...], ln1_b_ref[...]
    ln2_w, ln2_b = ln2_w_ref[...], ln2_b_ref[...]
    wq_t, bq = wq_t_ref[...], bq_ref[...]
    wo_t, bo = wo_t_ref[...], bo_ref[...]
    w1_t, b1 = w1_t_ref[...], b1_ref[...]
    w2_t, b2 = w2_t_ref[...], b2_ref[...]

    def layer_norm(v, w, b):
        # v is zero in padded lanes, so raw moments over the padded axis equal
        # the true-d_model moments; w/b are zero-padded so padded lanes stay 0.
        s1 = jnp.sum(v, axis=-1, keepdims=True)
        s2 = jnp.sum(v * v, axis=-1, keepdims=True)
        mu = s1 * inv_d
        var = s2 * inv_d - mu * mu       # biased variance (matches torch LN)
        return (v - mu) * jax.lax.rsqrt(var + eps) * w + b

    # ---- norm_1 (f32) -------------------------------------------------------
    xn = layer_norm(x, ln1_w, ln1_b)                         # (bb, S, Dp)
    xn_flat = xn.reshape(bb * S, Dp)                         # batch-fused rows

    # ---- attention: q_linear is applied to q, k AND v (faithful to PyTorch) -
    p = jnp.dot(xn_flat.astype(mm), wq_t,
                preferred_element_type=jnp.float32) + bq     # (bb*S, Dp) f32
    p3_m = p.reshape(bb, S, Dp).astype(mm)                   # single bf16 copy

    scores = jnp.einsum("bqd,bkd->bqk", p3_m, p3_m,
                        preferred_element_type=jnp.float32)  # (bb, S, S)
    # Scale the (bb,S,S) scores (cheaper than scaling a (bb,S,Dp) operand) and
    # add the host-prepared additive mask bias (replaces masked_fill).
    scores = scores * inv_sqrt_d + bias
    scores = scores - jnp.max(scores, axis=-1, keepdims=True)
    e = jnp.exp(scores)
    denom = jnp.sum(e, axis=-1, keepdims=True)
    attn = e * pl.reciprocal(denom, approx=True)             # softmax (EUP)

    ctx = jnp.einsum("bqk,bkd->bqd", attn.astype(mm), p3_m,
                     preferred_element_type=jnp.float32)     # (bb, S, Dp)
    attn_out = jnp.dot(ctx.reshape(bb * S, Dp).astype(mm), wo_t,
                       preferred_element_type=jnp.float32) + bo

    # ---- residual 1 (dropout_1 = identity in eval) --------------------------
    x2 = x.reshape(bb * S, Dp) + attn_out                    # (bb*S, Dp)

    # ---- norm_2 + feed-forward ----------------------------------------------
    xn2 = layer_norm(x2, ln2_w, ln2_b)
    h = jnp.dot(xn2.astype(mm), w1_t,
                preferred_element_type=jnp.float32) + b1
    h = jnp.maximum(h, 0.0)                                  # ReLU (dropout id)
    ff = jnp.dot(h.astype(mm), w2_t,
                 preferred_element_type=jnp.float32) + b2

    # ---- residual 2 (dropout_2 = identity in eval) --------------------------
    out_ref[...] = (x2 + ff).reshape(bb, S, Dp)              # lane-dense store
    if attn_ref is not None:
        # Lane-sparse (S-wide) store when S < 128 — only emitted when the
        # caller explicitly asks for the attention weights.
        attn_ref[...] = attn


def _round_up(n, m):
    return ((n + m - 1) // m) * m


def _pad_to(a, shape):
    pads = [(0, t - s) for s, t in zip(a.shape, shape)]
    if all(p == (0, 0) for p in pads):
        return a
    return jnp.pad(a, pads)


def transformer_block(x, mask, params, *, matmul_dtype=jnp.bfloat16,
                      batch_block=None, return_attn=True):
    B, S, D = x.shape
    d_ff = params["w1"].shape[0]
    Dp = _round_up(D, 128)               # lane-dense feature dim
    Fp = _round_up(d_ff, 128)

    # --- host-side prep (one-time, free relative to the kernel) --------------
    xp = _pad_to(x.astype(jnp.float32), (B, S, Dp))
    bias = ((mask.astype(jnp.float32) - 1.0) * 1.0e9).reshape(B, 1, S)

    wq_t = _pad_to(params["wq"].T, (Dp, Dp)).astype(matmul_dtype)
    wo_t = _pad_to(params["wo"].T, (Dp, Dp)).astype(matmul_dtype)
    w1_t = _pad_to(params["w1"].T, (Dp, Fp)).astype(matmul_dtype)
    w2_t = _pad_to(params["w2"].T, (Fp, Dp)).astype(matmul_dtype)
    bq = _pad_to(params["bq"].astype(jnp.float32), (1, Dp))
    bo = _pad_to(params["bo"].astype(jnp.float32), (1, Dp))
    b1 = _pad_to(params["b1"].astype(jnp.float32), (1, Fp))
    b2 = _pad_to(params["b2"].astype(jnp.float32), (1, Dp))
    ln1_w = _pad_to(params["ln1_w"].astype(jnp.float32), (1, Dp))
    ln1_b = _pad_to(params["ln1_b"].astype(jnp.float32), (1, Dp))
    ln2_w = _pad_to(params["ln2_w"].astype(jnp.float32), (1, Dp))
    ln2_b = _pad_to(params["ln2_b"].astype(jnp.float32), (1, Dp))

    # --- per-generation VMEM budget -------------------------------------------
    itemsize = jnp.dtype(matmul_dtype).itemsize
    try:
        vmem_cap = pltpu.get_tpu_info().vmem_capacity_bytes
    except Exception:
        vmem_cap = 64 * 2**20            # conservative (v7x per-TC capacity)
    vmem_ceiling = max(16 * 2**20, int(0.55 * vmem_cap))

    param_bytes = itemsize * (2 * Dp * Dp + 2 * Dp * Fp) + 4 * (6 * Dp + Fp)

    def footprint(bb_):
        blocks = 4 * (bb_ * S * Dp + bb_ * S)        # x + bias blocks
        blocks += 4 * bb_ * S * Dp                   # out block
        if return_attn:
            blocks += 4 * bb_ * S * S                # attn block
        interm = 4 * (6 * bb_ * S * max(Dp, Fp) + 3 * bb_ * S * S)
        return 2 * (blocks + param_bytes) + interm   # double-buffered blocks

    # --- batch tiling: feed the MXU >= 256 rows per step, keep >= 2 grid steps
    #     when possible (v7x megacore), sized against the VMEM budget ----------
    if batch_block is None:
        rows_target = 256                # v6e/v7x MXU is 2x256x256
        target = max(1, min(B, rows_target // max(S, 1)))
        if target >= B and B >= 2 and (B // 2) * S >= rows_target:
            target = max(1, B // 2)      # let both v7x TensorCores work
        batch_block = 1
        for c in range(min(target, B), 0, -1):
            if B % c == 0 and footprint(c) <= vmem_ceiling:
                batch_block = c
                break
    assert B % batch_block == 0
    bb = batch_block
    grid = (B // bb,)

    vmem_limit = int(min(max(footprint(bb), 16 * 2**20), vmem_ceiling))

    def resident(shape):
        zeros = (0,) * len(shape)
        # TODO(synk): single-buffer these constant-index-map blocks
        # (pipeline_mode=pl.Buffered(1)) once that is uniformly supported;
        # only the duplicate buffer is wasted today.
        return pl.BlockSpec(shape, lambda b, z=zeros: z)

    in_specs = [
        pl.BlockSpec((bb, S, Dp), lambda b: (b, 0, 0)),   # x (padded)
        pl.BlockSpec((bb, 1, S), lambda b: (b, 0, 0)),    # additive mask bias
        resident((1, Dp)), resident((1, Dp)),             # ln1 w, b
        resident((1, Dp)), resident((1, Dp)),             # ln2 w, b
        resident((Dp, Dp)), resident((1, Dp)),            # q_linear W^T, b
        resident((Dp, Dp)), resident((1, Dp)),            # out      W^T, b
        resident((Dp, Fp)), resident((1, Fp)),            # ff.linear_1 W^T, b
        resident((Fp, Dp)), resident((1, Dp)),            # ff.linear_2 W^T, b
    ]
    out_spec_main = pl.BlockSpec((bb, S, Dp), lambda b: (b, 0, 0))
    out_shape_main = jax.ShapeDtypeStruct((B, S, Dp), jnp.float32)
    if return_attn:
        out_specs = [out_spec_main,
                     pl.BlockSpec((bb, S, S), lambda b: (b, 0, 0))]
        out_shape = [out_shape_main,
                     jax.ShapeDtypeStruct((B, S, S), jnp.float32)]
    else:
        out_specs = out_spec_main
        out_shape = out_shape_main

    flops = 4 * B * S * (Dp * Dp + S * Dp + Dp * Fp)
    transcendentals = B * S * (S + 4)
    bytes_accessed = (4 * (2 * B * S * Dp + B * S)
                      + (4 * B * S * S if return_attn else 0)
                      + param_bytes)
    cost = pl.CostEstimate(flops=flops, transcendentals=transcendentals,
                           bytes_accessed=bytes_accessed)

    kernel = functools.partial(_transformer_block_kernel, d_model=D)
    outs = pl.pallas_call(
        kernel,
        grid=grid,
        in_specs=in_specs,
        out_specs=out_specs,
        out_shape=out_shape,
        compiler_params=pltpu.CompilerParams(
            dimension_semantics=("parallel",),
            vmem_limit_bytes=vmem_limit,
        ),
        cost_estimate=cost,
    )(xp, bias, ln1_w, ln1_b, ln2_w, ln2_b,
      wq_t, bq, wo_t, bo, w1_t, b1, w2_t, b2)

    if return_attn:
        out_p, attn = outs
        return out_p[..., :D], attn
    return outs[..., :D]


def transformer_block_ref(x, mask, params):
    """Pure-JAX f32 reference mirroring the PyTorch module (eval mode)."""
    eps = 1e-5
    d = x.shape[-1]

    def ln(v, w, b):
        mu = jnp.mean(v, axis=-1, keepdims=True)
        var = jnp.mean((v - mu) ** 2, axis=-1, keepdims=True)
        return (v - mu) / jnp.sqrt(var + eps) * w + b

    xn = ln(x, params["ln1_w"], params["ln1_b"])
    p = jnp.einsum("bsd,ed->bse", xn, params["wq"]) + params["bq"]
    scores = jnp.einsum("bqd,bkd->bqk", p, p / math.sqrt(d))
    scores = jnp.where(mask[:, None, :] == 0, -1.0e9, scores)
    attn = jax.nn.softmax(scores, axis=-1)
    ctx = jnp.einsum("bqk,bkd->bqd", attn, p)
    attn_out = jnp.einsum("bsd,ed->bse", ctx, params["wo"]) + params["bo"]
    x2 = x + attn_out
    xn2 = ln(x2, params["ln2_w"], params["ln2_b"])
    h = jax.nn.relu(jnp.einsum("bsd,fd->bsf", xn2, params["w1"]) + params["b1"])
    ff = jnp.einsum("bsf,df->bsd", h, params["w2"]) + params["b2"]
    return x2 + ff, attn


def init_params(key, d_model, d_ff):
    """Deterministic init mimicking PyTorch defaults (U(-1/sqrt(fan_in), ...))."""
    ks = jax.random.split(key, 4)

    def lin(k, out_f, in_f):
        kw, kb = jax.random.split(k)
        bound = 1.0 / math.sqrt(in_f)
        w = jax.random.uniform(kw, (out_f, in_f), jnp.float32, -bound, bound)
        b = jax.random.uniform(kb, (1, out_f), jnp.float32, -bound, bound)
        return w, b

    wq, bq = lin(ks[0], d_model, d_model)
    wo, bo = lin(ks[1], d_model, d_model)
    w1, b1 = lin(ks[2], d_ff, d_model)
    w2, b2 = lin(ks[3], d_model, d_ff)
    return dict(
        ln1_w=jnp.ones((1, d_model), jnp.float32),
        ln1_b=jnp.zeros((1, d_model), jnp.float32),
        ln2_w=jnp.ones((1, d_model), jnp.float32),
        ln2_b=jnp.zeros((1, d_model), jnp.float32),
        wq=wq, bq=bq, wo=wo, bo=bo,
        w1=w1, b1=b1, w2=w2, b2=b2,
    )


if __name__ == "__main__":
    B, S, D = 2, 8, 32
    D_FF = 1024  # FeedForward default d_ff in the PyTorch module

    key = jax.random.PRNGKey(0)
    kx, kp = jax.random.split(key, 2)

    x = jax.random.normal(kx, (B, S, D), jnp.float32)
    # binary padding mask: 1 = keep, 0 = masked (last two positions of batch 1)
    mask = jnp.ones((B, S), jnp.float32).at[1, -2:].set(0.0)

    params = init_params(kp, D, D_FF)

    out, attn_weights = transformer_block(x, mask, params)
    jax.block_until_ready((out, attn_weights))

    assert out.shape == (B, S, D) and attn_weights.shape == (B, S, S)
    assert bool(jnp.all(jnp.isfinite(out)))
    assert bool(jnp.all(jnp.isfinite(attn_weights)))

    # Loose check vs the pure-JAX f32 reference (bf16 matmuls + approx recip
    # introduce small, expected drift).
    out_r, attn_r = transformer_block_ref(x, mask, params)
    out_err = float(jnp.max(jnp.abs(out - out_r)))
    attn_err = float(jnp.max(jnp.abs(attn_weights - attn_r)))
    out_scale = max(1.0, float(jnp.max(jnp.abs(out_r))))
    assert out_err <= 5e-2 * out_scale, f"output mismatch: {out_err}"
    assert attn_err <= 5e-2, f"attention mismatch: {attn_err}"

    print("KERNEL_OK")
</pallas_src>

<mosaic_0001>
module attributes {stable_mosaic.version = 11 : i64} {
  func.func @_transformer_block_kernel(%arg0: i32, %arg1: memref<2x8x128xf32, #tpu.memory_space<vmem>>, %arg2: memref<2x1x8xf32, #tpu.memory_space<vmem>>, %arg3: memref<1x128xf32, #tpu.memory_space<vmem>>, %arg4: memref<1x128xf32, #tpu.memory_space<vmem>>, %arg5: memref<1x128xf32, #tpu.memory_space<vmem>>, %arg6: memref<1x128xf32, #tpu.memory_space<vmem>>, %arg7: memref<128x128xbf16, #tpu.memory_space<vmem>>, %arg8: memref<1x128xf32, #tpu.memory_space<vmem>>, %arg9: memref<128x128xbf16, #tpu.memory_space<vmem>>, %arg10: memref<1x128xf32, #tpu.memory_space<vmem>>, %arg11: memref<128x1024xbf16, #tpu.memory_space<vmem>>, %arg12: memref<1x1024xf32, #tpu.memory_space<vmem>>, %arg13: memref<1024x128xbf16, #tpu.memory_space<vmem>>, %arg14: memref<1x128xf32, #tpu.memory_space<vmem>>, %arg15: memref<2x8x128xf32, #tpu.memory_space<vmem>>, %arg16: memref<2x8x8xf32, #tpu.memory_space<vmem>>) attributes {dimension_semantics = [#tpu.dimension_semantics<parallel>], iteration_bounds = array<i64: 1>, scalar_prefetch = 0 : i64, scratch_operands = 0 : i64, tpu.core_type = #tpu.core_type<tc>, window_params = [{transform_indices = @transform_0, window_bounds = array<i64: 2, 8, 128>}, {transform_indices = @transform_1, window_bounds = array<i64: 2, 1, 8>}, {pipeline_mode = #tpu.pipeline_mode<synchronous>, transform_indices = @transform_2, window_bounds = array<i64: 1, 128>}, {pipeline_mode = #tpu.pipeline_mode<synchronous>, transform_indices = @transform_3, window_bounds = array<i64: 1, 128>}, {pipeline_mode = #tpu.pipeline_mode<synchronous>, transform_indices = @transform_4, window_bounds = array<i64: 1, 128>}, {pipeline_mode = #tpu.pipeline_mode<synchronous>, transform_indices = @transform_5, window_bounds = array<i64: 1, 128>}, {pipeline_mode = #tpu.pipeline_mode<synchronous>, transform_indices = @transform_6, window_bounds = array<i64: 128, 128>}, {pipeline_mode = #tpu.pipeline_mode<synchronous>, transform_indices = @transform_7, window_bounds = array<i64: 1, 128>}, {pipeline_mode = #tpu.pipeline_mode<synchronous>, transform_indices = @transform_8, window_bounds = array<i64: 128, 128>}, {pipeline_mode = #tpu.pipeline_mode<synchronous>, transform_indices = @transform_9, window_bounds = array<i64: 1, 128>}, {pipeline_mode = #tpu.pipeline_mode<synchronous>, transform_indices = @transform_10, window_bounds = array<i64: 128, 1024>}, {pipeline_mode = #tpu.pipeline_mode<synchronous>, transform_indices = @transform_11, window_bounds = array<i64: 1, 1024>}, {pipeline_mode = #tpu.pipeline_mode<synchronous>, transform_indices = @transform_12, window_bounds = array<i64: 1024, 128>}, {pipeline_mode = #tpu.pipeline_mode<synchronous>, transform_indices = @transform_13, window_bounds = array<i64: 1, 128>}, {transform_indices = @transform_14, window_bounds = array<i64: 2, 8, 128>}, {transform_indices = @transform_15, window_bounds = array<i64: 2, 8, 8>}]} {
    %c0 = arith.constant 0 : index
    %c0_0 = arith.constant 0 : index
    %c0_1 = arith.constant 0 : index
    %0 = vector.load %arg1[%c0, %c0_0, %c0_1] : memref<2x8x128xf32, #tpu.memory_space<vmem>>, vector<2x8x128xf32>
    %c0_2 = arith.constant 0 : index
    %c0_3 = arith.constant 0 : index
    %c0_4 = arith.constant 0 : index
    %1 = vector.load %arg2[%c0_2, %c0_3, %c0_4] : memref<2x1x8xf32, #tpu.memory_space<vmem>>, vector<2x1x8xf32>
    %c0_5 = arith.constant 0 : index
    %c0_6 = arith.constant 0 : index
    %2 = vector.load %arg3[%c0_5, %c0_6] : memref<1x128xf32, #tpu.memory_space<vmem>>, vector<1x128xf32>
    %c0_7 = arith.constant 0 : index
    %c0_8 = arith.constant 0 : index
    %3 = vector.load %arg4[%c0_7, %c0_8] : memref<1x128xf32, #tpu.memory_space<vmem>>, vector<1x128xf32>
    %c0_9 = arith.constant 0 : index
    %c0_10 = arith.constant 0 : index
    %4 = vector.load %arg5[%c0_9, %c0_10] : memref<1x128xf32, #tpu.memory_space<vmem>>, vector<1x128xf32>
    %c0_11 = arith.constant 0 : index
    %c0_12 = arith.constant 0 : index
    %5 = vector.load %arg6[%c0_11, %c0_12] : memref<1x128xf32, #tpu.memory_space<vmem>>, vector<1x128xf32>
    %c0_13 = arith.constant 0 : index
    %c0_14 = arith.constant 0 : index
    %6 = vector.load %arg7[%c0_13, %c0_14] : memref<128x128xbf16, #tpu.memory_space<vmem>>, vector<128x128xbf16>
    %c0_15 = arith.constant 0 : index
    %c0_16 = arith.constant 0 : index
    %7 = vector.load %arg8[%c0_15, %c0_16] : memref<1x128xf32, #tpu.memory_space<vmem>>, vector<1x128xf32>
    %c0_17 = arith.constant 0 : index
    %c0_18 = arith.constant 0 : index
    %8 = vector.load %arg9[%c0_17, %c0_18] : memref<128x128xbf16, #tpu.memory_space<vmem>>, vector<128x128xbf16>
    %c0_19 = arith.constant 0 : index
    %c0_20 = arith.constant 0 : index
    %9 = vector.load %arg10[%c0_19, %c0_20] : memref<1x128xf32, #tpu.memory_space<vmem>>, vector<1x128xf32>
    %c0_21 = arith.constant 0 : index
    %c0_22 = arith.constant 0 : index
    %10 = vector.load %arg11[%c0_21, %c0_22] : memref<128x1024xbf16, #tpu.memory_space<vmem>>, vector<128x1024xbf16>
    %c0_23 = arith.constant 0 : index
    %c0_24 = arith.constant 0 : index
    %11 = vector.load %arg12[%c0_23, %c0_24] : memref<1x1024xf32, #tpu.memory_space<vmem>>, vector<1x1024xf32>
    %c0_25 = arith.constant 0 : index
    %c0_26 = arith.constant 0 : index
    %12 = vector.load %arg13[%c0_25, %c0_26] : memref<1024x128xbf16, #tpu.memory_space<vmem>>, vector<1024x128xbf16>
    %c0_27 = arith.constant 0 : index
    %c0_28 = arith.constant 0 : index
    %13 = vector.load %arg14[%c0_27, %c0_28] : memref<1x128xf32, #tpu.memory_space<vmem>>, vector<1x128xf32>
    %cst = arith.constant dense<0.000000e+00> : vector<2x8xf32>
    %14 = vector.multi_reduction <add>, %0, %cst [2] : vector<2x8x128xf32> to vector<2x8xf32>
    %15 = vector.shape_cast %14 : vector<2x8xf32> to vector<2x8x1xf32>
    %16 = arith.mulf %0, %0 : vector<2x8x128xf32>
    %cst_29 = arith.constant dense<0.000000e+00> : vector<2x8xf32>
    %17 = vector.multi_reduction <add>, %16, %cst_29 [2] : vector<2x8x128xf32> to vector<2x8xf32>
    %18 = vector.shape_cast %17 : vector<2x8xf32> to vector<2x8x1xf32>
    %cst_30 = arith.constant 3.125000e-02 : f32
    %19 = vector.broadcast %cst_30 : f32 to vector<2x8x1xf32>
    %20 = arith.mulf %15, %19 : vector<2x8x1xf32>
    %cst_31 = arith.constant 3.125000e-02 : f32
    %21 = vector.broadcast %cst_31 : f32 to vector<2x8x1xf32>
    %22 = arith.mulf %18, %21 : vector<2x8x1xf32>
    %23 = arith.mulf %20, %20 : vector<2x8x1xf32>
    %24 = arith.subf %22, %23 : vector<2x8x1xf32>
    %25 = vector.broadcast %20 : vector<2x8x1xf32> to vector<2x8x128xf32>
    %26 = arith.subf %0, %25 : vector<2x8x128xf32>
    %cst_32 = arith.constant 9.99999974E-6 : f32
    %27 = vector.broadcast %cst_32 : f32 to vector<2x8x1xf32>
    %28 = arith.addf %24, %27 : vector<2x8x1xf32>
    %29 = math.rsqrt %28 : vector<2x8x1xf32>
    %30 = vector.broadcast %29 : vector<2x8x1xf32> to vector<2x8x128xf32>
    %31 = arith.mulf %26, %30 : vector<2x8x128xf32>
    %32 = vector.shape_cast %2 : vector<1x128xf32> to vector<1x1x128xf32>
    %33 = vector.broadcast %32 : vector<1x1x128xf32> to vector<2x8x128xf32>
    %34 = arith.mulf %31, %33 : vector<2x8x128xf32>
    %35 = vector.shape_cast %3 : vector<1x128xf32> to vector<1x1x128xf32>
    %36 = vector.broadcast %35 : vector<1x1x128xf32> to vector<2x8x128xf32>
    %37 = arith.addf %34, %36 : vector<2x8x128xf32>
    %38 = vector.shape_cast %37 : vector<2x8x128xf32> to vector<16x128xf32>
    %39 = arith.truncf %38 : vector<16x128xf32> to vector<16x128xbf16>
    %cst_33 = arith.constant dense<0.000000e+00> : vector<16x128xf32>
    %40 = tpu.matmul %39, %6, %cst_33 {dimension_numbers = #tpu.dot_dimension_numbers<[1], [0], [0], [1], [0, 0, 1, 1], [], []>} : vector<16x128xbf16>, vector<128x128xbf16>, vector<16x128xf32> -> vector<16x128xf32>
    %41 = vector.broadcast %7 : vector<1x128xf32> to vector<16x128xf32>
    %42 = arith.addf %40, %41 : vector<16x128xf32>
    %43 = vector.shape_cast %42 : vector<16x128xf32> to vector<2x8x128xf32>
    %44 = arith.truncf %43 : vector<2x8x128xf32> to vector<2x8x128xbf16>
    "tpu.trace_start"() <{level = 10 : i32, message = "bqd,bkd->bqk"}> : () -> ()
    %cst_34 = arith.constant dense<0.000000e+00> : vector<2x8x8xf32>
    %45 = tpu.matmul %44, %44, %cst_34 {dimension_numbers = #tpu.dot_dimension_numbers<[2], [2], [1], [1], [0, 0, 0, 1, 1, 1], [0], [0]>} : vector<2x8x128xbf16>, vector<2x8x128xbf16>, vector<2x8x8xf32> -> vector<2x8x8xf32>
    "tpu.trace_stop"() : () -> ()
    %cst_35 = arith.constant 0.176776692 : f32
    %46 = vector.broadcast %cst_35 : f32 to vector<2x8x8xf32>
    %47 = arith.mulf %45, %46 : vector<2x8x8xf32>
    %48 = vector.broadcast %1 : vector<2x1x8xf32> to vector<2x8x8xf32>
    %49 = arith.addf %47, %48 : vector<2x8x8xf32>
    %cst_36 = arith.constant dense<0xFF800000> : vector<2x8xf32>
    %50 = vector.multi_reduction <maximumf>, %49, %cst_36 [2] : vector<2x8x8xf32> to vector<2x8xf32>
    %51 = vector.shape_cast %50 : vector<2x8xf32> to vector<2x8x1xf32>
    %52 = vector.broadcast %51 : vector<2x8x1xf32> to vector<2x8x8xf32>
    %53 = arith.subf %49, %52 : vector<2x8x8xf32>
    %54 = math.exp %53 : vector<2x8x8xf32>
    %cst_37 = arith.constant dense<0.000000e+00> : vector<2x8xf32>
    %55 = vector.multi_reduction <add>, %54, %cst_37 [2] : vector<2x8x8xf32> to vector<2x8xf32>
    %56 = vector.shape_cast %55 : vector<2x8xf32> to vector<2x8x1xf32>
    %57 = tpu.reciprocal %56 {approx = true} : vector<2x8x1xf32> -> vector<2x8x1xf32>
    %58 = vector.broadcast %57 : vector<2x8x1xf32> to vector<2x8x8xf32>
    %59 = arith.mulf %54, %58 : vector<2x8x8xf32>
    %60 = arith.truncf %59 : vector<2x8x8xf32> to vector<2x8x8xbf16>
    "tpu.trace_start"() <{level = 10 : i32, message = "bqk,bkd->bqd"}> : () -> ()
    %cst_38 = arith.constant dense<0.000000e+00> : vector<2x8x128xf32>
    %61 = tpu.matmul %60, %44, %cst_38 {dimension_numbers = #tpu.dot_dimension_numbers<[2], [1], [1], [2], [0, 0, 0, 1, 1, 2], [0], [0]>} : vector<2x8x8xbf16>, vector<2x8x128xbf16>, vector<2x8x128xf32> -> vector<2x8x128xf32>
    "tpu.trace_stop"() : () -> ()
    %62 = vector.shape_cast %61 : vector<2x8x128xf32> to vector<16x128xf32>
    %63 = arith.truncf %62 : vector<16x128xf32> to vector<16x128xbf16>
    %cst_39 = arith.constant dense<0.000000e+00> : vector<16x128xf32>
    %64 = tpu.matmul %63, %8, %cst_39 {dimension_numbers = #tpu.dot_dimension_numbers<[1], [0], [0], [1], [0, 0, 1, 1], [], []>} : vector<16x128xbf16>, vector<128x128xbf16>, vector<16x128xf32> -> vector<16x128xf32>
    %65 = vector.broadcast %9 : vector<1x128xf32> to vector<16x128xf32>
    %66 = arith.addf %64, %65 : vector<16x128xf32>
    %67 = vector.shape_cast %0 : vector<2x8x128xf32> to vector<16x128xf32>
    %68 = arith.addf %67, %66 : vector<16x128xf32>
    %cst_40 = arith.constant dense<0.000000e+00> : vector<16xf32>
    %69 = vector.multi_reduction <add>, %68, %cst_40 [1] : vector<16x128xf32> to vector<16xf32>
    %70 = vector.shape_cast %69 : vector<16xf32> to vector<16x1xf32>
    %71 = arith.mulf %68, %68 : vector<16x128xf32>
    %cst_41 = arith.constant dense<0.000000e+00> : vector<16xf32>
    %72 = vector.multi_reduction <add>, %71, %cst_41 [1] : vector<16x128xf32> to vector<16xf32>
    %73 = vector.shape_cast %72 : vector<16xf32> to vector<16x1xf32>
    %cst_42 = arith.constant 3.125000e-02 : f32
    %74 = vector.broadcast %cst_42 : f32 to vector<16x1xf32>
    %75 = arith.mulf %70, %74 : vector<16x1xf32>
    %cst_43 = arith.constant 3.125000e-02 : f32
    %76 = vector.broadcast %cst_43 : f32 to vector<16x1xf32>
    %77 = arith.mulf %73, %76 : vector<16x1xf32>
    %78 = arith.mulf %75, %75 : vector<16x1xf32>
    %79 = arith.subf %77, %78 : vector<16x1xf32>
    %80 = vector.broadcast %75 : vector<16x1xf32> to vector<16x128xf32>
    %81 = arith.subf %68, %80 : vector<16x128xf32>
    %cst_44 = arith.constant 9.99999974E-6 : f32
    %82 = vector.broadcast %cst_44 : f32 to vector<16x1xf32>
    %83 = arith.addf %79, %82 : vector<16x1xf32>
    %84 = math.rsqrt %83 : vector<16x1xf32>
    %85 = vector.broadcast %84 : vector<16x1xf32> to vector<16x128xf32>
    %86 = arith.mulf %81, %85 : vector<16x128xf32>
    %87 = vector.broadcast %4 : vector<1x128xf32> to vector<16x128xf32>
    %88 = arith.mulf %86, %87 : vector<16x128xf32>
    %89 = vector.broadcast %5 : vector<1x128xf32> to vector<16x128xf32>
    %90 = arith.addf %88, %89 : vector<16x128xf32>
    %91 = arith.truncf %90 : vector<16x128xf32> to vector<16x128xbf16>
    %cst_45 = arith.constant dense<0.000000e+00> : vector<16x1024xf32>
    %92 = tpu.matmul %91, %10, %cst_45 {dimension_numbers = #tpu.dot_dimension_numbers<[1], [0], [0], [1], [0, 0, 1, 1], [], []>} : vector<16x128xbf16>, vector<128x1024xbf16>, vector<16x1024xf32> -> vector<16x1024xf32>
    %93 = vector.broadcast %11 : vector<1x1024xf32> to vector<16x1024xf32>
    %94 = arith.addf %92, %93 : vector<16x1024xf32>
    %cst_46 = arith.constant 0.000000e+00 : f32
    %95 = vector.broadcast %cst_46 : f32 to vector<16x1024xf32>
    %96 = arith.maximumf %94, %95 : vector<16x1024xf32>
    %97 = arith.truncf %96 : vector<16x1024xf32> to vector<16x1024xbf16>
    %cst_47 = arith.constant dense<0.000000e+00> : vector<16x128xf32>
    %98 = tpu.matmul %97, %12, %cst_47 {dimension_numbers = #tpu.dot_dimension_numbers<[1], [0], [0], [1], [0, 0, 1, 1], [], []>} : vector<16x1024xbf16>, vector<1024x128xbf16>, vector<16x128xf32> -> vector<16x128xf32>
    %99 = vector.broadcast %13 : vector<1x128xf32> to vector<16x128xf32>
    %100 = arith.addf %98, %99 : vector<16x128xf32>
    %101 = arith.addf %68, %100 : vector<16x128xf32>
    %102 = vector.shape_cast %101 : vector<16x128xf32> to vector<2x8x128xf32>
    %c0_48 = arith.constant 0 : index
    %c0_49 = arith.constant 0 : index
    %c0_50 = arith.constant 0 : index
    %103 = vector.load %arg15[%c0_48, %c0_49, %c0_50] : memref<2x8x128xf32, #tpu.memory_space<vmem>>, vector<2x8x128xf32>
    tpu.vector_store %arg15[%c0_48, %c0_49, %c0_50], %102 {strides = array<i32>} : memref<2x8x128xf32, #tpu.memory_space<vmem>>, vector<2x8x128xf32>,
    %c0_51 = arith.constant 0 : index
    %c0_52 = arith.constant 0 : index
    %c0_53 = arith.constant 0 : index
    %104 = vector.load %arg16[%c0_51, %c0_52, %c0_53] : memref<2x8x8xf32, #tpu.memory_space<vmem>>, vector<2x8x8xf32>
    tpu.vector_store %arg16[%c0_51, %c0_52, %c0_53], %59 {strides = array<i32>} : memref<2x8x8xf32, #tpu.memory_space<vmem>>, vector<2x8x8xf32>,
    return
  }
  func.func @transform_0(%arg0: i32) -> (i32, i32, i32) {
    %c0_i32 = arith.constant 0 : i32
    %c0_i32_0 = arith.constant 0 : i32
    %c0_i32_1 = arith.constant 0 : i32
    return %arg0, %c0_i32, %c0_i32_0 : i32, i32, i32
  }
  func.func @transform_1(%arg0: i32) -> (i32, i32, i32) {
    %c0_i32 = arith.constant 0 : i32
    %c0_i32_0 = arith.constant 0 : i32
    %c0_i32_1 = arith.constant 0 : i32
    return %arg0, %c0_i32, %c0_i32_0 : i32, i32, i32
  }
  func.func @transform_2(%arg0: i32) -> (i32, i32) {
    %c0_i32 = arith.constant 0 : i32
    %c0_i32_0 = arith.constant 0 : i32
    %c0_i32_1 = arith.constant 0 : i32
    return %c0_i32, %c0_i32_0 : i32, i32
  }
  func.func @transform_3(%arg0: i32) -> (i32, i32) {
    %c0_i32 = arith.constant 0 : i32
    %c0_i32_0 = arith.constant 0 : i32
    %c0_i32_1 = arith.constant 0 : i32
    return %c0_i32, %c0_i32_0 : i32, i32
  }
  func.func @transform_4(%arg0: i32) -> (i32, i32) {
    %c0_i32 = arith.constant 0 : i32
    %c0_i32_0 = arith.constant 0 : i32
    %c0_i32_1 = arith.constant 0 : i32
    return %c0_i32, %c0_i32_0 : i32, i32
  }
  func.func @transform_5(%arg0: i32) -> (i32, i32) {
    %c0_i32 = arith.constant 0 : i32
    %c0_i32_0 = arith.constant 0 : i32
    %c0_i32_1 = arith.constant 0 : i32
    return %c0_i32, %c0_i32_0 : i32, i32
  }
  func.func @transform_6(%arg0: i32) -> (i32, i32) {
    %c0_i32 = arith.constant 0 : i32
    %c0_i32_0 = arith.constant 0 : i32
    %c0_i32_1 = arith.constant 0 : i32
    return %c0_i32, %c0_i32_0 : i32, i32
  }
  func.func @transform_7(%arg0: i32) -> (i32, i32) {
    %c0_i32 = arith.constant 0 : i32
    %c0_i32_0 = arith.constant 0 : i32
    %c0_i32_1 = arith.constant 0 : i32
    return %c0_i32, %c0_i32_0 : i32, i32
  }
  func.func @transform_8(%arg0: i32) -> (i32, i32) {
    %c0_i32 = arith.constant 0 : i32
    %c0_i32_0 = arith.constant 0 : i32
    %c0_i32_1 = arith.constant 0 : i32
    return %c0_i32, %c0_i32_0 : i32, i32
  }
  func.func @transform_9(%arg0: i32) -> (i32, i32) {
    %c0_i32 = arith.constant 0 : i32
    %c0_i32_0 = arith.constant 0 : i32
    %c0_i32_1 = arith.constant 0 : i32
    return %c0_i32, %c0_i32_0 : i32, i32
  }
  func.func @transform_10(%arg0: i32) -> (i32, i32) {
    %c0_i32 = arith.constant 0 : i32
    %c0_i32_0 = arith.constant 0 : i32
    %c0_i32_1 = arith.constant 0 : i32
    return %c0_i32, %c0_i32_0 : i32, i32
  }
  func.func @transform_11(%arg0: i32) -> (i32, i32) {
    %c0_i32 = arith.constant 0 : i32
    %c0_i32_0 = arith.constant 0 : i32
    %c0_i32_1 = arith.constant 0 : i32
    return %c0_i32, %c0_i32_0 : i32, i32
  }
  func.func @transform_12(%arg0: i32) -> (i32, i32) {
    %c0_i32 = arith.constant 0 : i32
    %c0_i32_0 = arith.constant 0 : i32
    %c0_i32_1 = arith.constant 0 : i32
    return %c0_i32, %c0_i32_0 : i32, i32
  }
  func.func @transform_13(%arg0: i32) -> (i32, i32) {
    %c0_i32 = arith.constant 0 : i32
    %c0_i32_0 = arith.constant 0 : i32
    %c0_i32_1 = arith.constant 0 : i32
    return %c0_i32, %c0_i32_0 : i32, i32
  }
  func.func @transform_14(%arg0: i32) -> (i32, i32, i32) {
    %c0_i32 = arith.constant 0 : i32
    %c0_i32_0 = arith.constant 0 : i32
    %c0_i32_1 = arith.constant 0 : i32
    return %arg0, %c0_i32, %c0_i32_0 : i32, i32, i32
  }
  func.func @transform_15(%arg0: i32) -> (i32, i32, i32) {
    %c0_i32 = arith.constant 0 : i32
    %c0_i32_0 = arith.constant 0 : i32
    %c0_i32_1 = arith.constant 0 : i32
    return %arg0, %c0_i32, %c0_i32_0 : i32, i32, i32
  }
}

</mosaic_0001>

<bundles_post_ra>
// kernel: tpu_custom_call.1
= control target key start
LH: loop header
LB: loop body
LE: loop exit
PB: predicated region body
PF: predicated region fallthrough
CT: control target
= control target key end

     0   :  { %21 = vsyncpa [#allocation3], 0  ;;  %s2960_s0 = inlined_call_operand.hbm [shape: f32[2,8,128], index: 0, kind: input, shape index: {}]   ;;  %s2961_s1 = inlined_call_operand.vmem [shape: f32[2,1,8], index: 1, kind: input, shape index: {}]   ;;  %s2962_s2 = inlined_call_operand.vmem [shape: f32[1,128], index: 2, kind: input, shape index: {}]   ;;  %s2963_s3 = inlined_call_operand.vmem [shape: f32[1,128], index: 3, kind: input, shape index: {}]   ;;  %s2964_s4 = inlined_call_operand.vmem [shape: f32[1,128], index: 4, kind: input, shape index: {}]   ;;  %s2965_s5 = inlined_call_operand.vmem [shape: f32[1,128], index: 5, kind: input, shape index: {}]   ;;  %s2966_s6 = inlined_call_operand.hbm [shape: bf16[128,128], index: 6, kind: input, shape index: {}]   ;;  %s2967_s7 = inlined_call_operand.vmem [shape: f32[1,128], index: 7, kind: input, shape index: {}]   ;;  %s2968_s8 = inlined_call_operand.hbm [shape: bf16[128,128], index: 8, kind: input, shape index: {}]   ;;  %s2969_s9 = inlined_call_operand.vmem [shape: f32[1,128], index: 9, kind: input, shape index: {}]   ;;  %s2970_s10 = inlined_call_operand.hbm [shape: bf16[128,1024], index: 10, kind: input, shape index: {}]   ;;  %s2971_s11 = inlined_call_operand.vmem [shape: f32[1,1024], index: 11, kind: input, shape index: {}]   ;;  %s2972_s12 = inlined_call_operand.hbm [shape: bf16[1024,128], index: 12, kind: input, shape index: {}]   ;;  %s2973_s13 = inlined_call_operand.vmem [shape: f32[1,128], index: 13, kind: input, shape index: {}]   ;;  %s2974_s14 = inlined_call_operand.hbm [shape: f32[2,8,128], index: 14, kind: output, shape index: {0}]   ;;  %s2975_s15 = inlined_call_operand.hbm [shape: f32[2,8,8], index: 15, kind: output, shape index: {1}]  }
   0x1   :  { %22 = vsyncpa [#allocation6], 0 }
   0x2   :  { %23 = vsyncpa [#allocation9], 0 }
   0x3   :  { %24 = vsyncpa [#allocation4], 0 }
   0x4   :  { %25 = vsyncpa [#allocation13], 0  ;;  %s2612_s18 = smov [#allocation5]   ;;  %s2448_s22 = scalar_lea.hbm %s2966_s6, 1024 }
   0x5   :  { %s53_s19 = sshll.u32 %s2612_s18, 4  ;;  %p2449_p0 = scmp.ne.s32.totalorder %s2966_s6, %s2448_s22  ;;  %s54_s19 = int_to_ptr.vmem [resolvable:$true] %s53_s19 }
   0x6   :  { %p2452_p1 = scmp.lt.u32.totalorder %s2448_s22, %s2966_s6 }
   0x8   :  { %p2454_p2 = pnand %p2452_p1, %p2449_p0 }
   0xa   :  { %2457 = shalt.err (!%p2454_p2)
}
   0xb   :  { %s2458_s27 = scalar_lea.vmem %s54_s19, 1024  ;;  %p2463_p4 = scmp.lt.s32.totalorder %s54_s19, %s54_s19 }
   0xc   :  { %p2459_p3 = scmp.ne.s32.totalorder %s54_s19, %s2458_s27  ;;  %p2464_p5 = scmp.lt.s32.totalorder %s2458_s27, %s2458_s27 }
   0xe   :  { %p2465_p6 = por %p2464_p5, %p2463_p4 }
  0x10   :  { %p2466_p7 = pnand %p2465_p6, %p2459_p3 }
  0x12   :  { %2469 = shalt.err (!%p2466_p7)
}
  0x13   :  { %s2976_s28 = smov 64   ;;  %s2614_s29 = smov 4  }
  0x14   :  { %59 = dma.hbm_to_vmem [thread:$0]  %s2966_s6, 1024, %s54_s19, [#allocation6], %s2976_s28, %s2976_s28, %s2614_s29  }
  0x15   :  { %s2615_s17 = smov [#allocation8]   ;;  %s2470_s22 = scalar_lea.hbm %s2970_s10, 8192 }
  0x16   :  { %s81_s18 = sshll.u32 %s2615_s17, 4  ;;  %p2471_p8 = scmp.ne.s32.totalorder %s2970_s10, %s2470_s22  ;;  %s82_s18 = int_to_ptr.vmem [resolvable:$true] %s81_s18 }
  0x17   :  { %p2474_p9 = scmp.lt.u32.totalorder %s2470_s22, %s2970_s10 }
  0x19   :  { %p2476_p10 = pnand %p2474_p9, %p2471_p8 }
  0x1b   :  { %2479 = shalt.err (!%p2476_p10)
}
  0x1c   :  { %s2480_s27 = scalar_lea.vmem %s82_s18, 8192  ;;  %p2485_p12 = scmp.lt.s32.totalorder %s82_s18, %s82_s18 }
  0x1d   :  { %p2481_p11 = scmp.ne.s32.totalorder %s82_s18, %s2480_s27  ;;  %p2486_p13 = scmp.lt.s32.totalorder %s2480_s27, %s2480_s27 }
  0x1f   :  { %p2487_p0 = por %p2486_p13, %p2485_p12 }
  0x21   :  { %p2488_p1 = pnand %p2487_p0, %p2481_p11 }
  0x23   :  { %2491 = shalt.err (!%p2488_p1)
}
  0x24   :  { %s2616_s6 = smov 512   ;;  %s2617_s19 = smov 32  }
  0x25   :  { %87 = dma.hbm_to_vmem [thread:$0]  %s2970_s10, 8192, %s82_s18, [#allocation9], %s2616_s6, %s2616_s6, %s2617_s19  }
  0x26   :  { %s2618_s17 = smov [#allocation2]   ;;  %s2492_s23 = scalar_lea.hbm %s2960_s0, 256 }
  0x27   :  { %s31_s20 = sshll.u32 %s2618_s17, 4  ;;  %p2493_p2 = scmp.ne.s32.totalorder %s2960_s0, %s2492_s23  ;;  %s32_s20 = int_to_ptr.vmem [resolvable:$true] %s31_s20 }
  0x28   :  { %p2496_p3 = scmp.lt.u32.totalorder %s2492_s23, %s2960_s0 }
  0x2a   :  { %p2498_p4 = pnand %p2496_p3, %p2493_p2 }
  0x2c   :  { %2501 = shalt.err (!%p2498_p4)
}
  0x2d   :  { %s2502_s28 = scalar_lea.vmem %s32_s20, 256  ;;  %p2507_p6 = scmp.lt.s32.totalorder %s32_s20, %s32_s20 }
  0x2e   :  { %p2503_p5 = scmp.ne.s32.totalorder %s32_s20, %s2502_s28  ;;  %p2508_p7 = scmp.lt.s32.totalorder %s2502_s28, %s2502_s28 }
  0x30   :  { %p2509_p8 = por %p2508_p7, %p2507_p6 }
  0x32   :  { %p2510_p9 = pnand %p2509_p8, %p2503_p5 }
  0x34   :  { %2513 = shalt.err (!%p2510_p9)
}
  0x35   :  { %s2619_s10 = smov 128   ;;  %s2620_s18 = smov 8  }
  0x36   :  { %37 = dma.hbm_to_vmem [thread:$0]  %s2960_s0, 256, %s32_s20, [#allocation3], %s2619_s10, %s2619_s10, %s2620_s18  }
  0x37   :  { %s2621_s30 = smov [#allocation7]   ;;  %s2622_s17 = smov [#allocation10]  }
  0x38   :  { %s67_s16 = sshll.u32 %s2621_s30, 4  ;;  %s95_s21 = sshll.u32 %s2622_s17, 4  ;;  %s68_s16 = int_to_ptr.vmem [resolvable:$true] %s67_s16  ;;  %s96_s21 = int_to_ptr.vmem [resolvable:$true] %s95_s21 }
  0x39   :  { %s2514_s28 = scalar_lea.hbm %s2968_s8, 1024 }
  0x3a   :  { %p2515_p10 = scmp.ne.s32.totalorder %s2968_s8, %s2514_s28  ;;  %p2518_p11 = scmp.lt.u32.totalorder %s2514_s28, %s2968_s8 }
  0x3c   :  { %p2520_p12 = pnand %p2518_p11, %p2515_p10 }
  0x3e   :  { %2523 = shalt.err (!%p2520_p12)
}
  0x3f   :  { %s2524_s0 = scalar_lea.vmem %s68_s16, 1024  ;;  %p2529_p0 = scmp.lt.s32.totalorder %s68_s16, %s68_s16 }
  0x40   :  { %p2525_p13 = scmp.ne.s32.totalorder %s68_s16, %s2524_s0  ;;  %p2530_p1 = scmp.lt.s32.totalorder %s2524_s0, %s2524_s0 }
  0x42   :  { %p2531_p2 = por %p2530_p1, %p2529_p0 }
  0x44   :  { %p2532_p3 = pnand %p2531_p2, %p2525_p13 }
  0x46   :  { %2535 = shalt.err (!%p2532_p3)
}
  0x47   :  { %s2978_s20 = smov 64   ;;  %s2536_s22 = scalar_lea.hbm %s2972_s12, 8192 }
  0x48   :  { %73 = dma.hbm_to_vmem [thread:$0]  %s2968_s8, 1024, %s68_s16, [#allocation6], %s2978_s20, %s2978_s20, %s2614_s29  }
  0x49   :  { %p2537_p4 = scmp.ne.s32.totalorder %s2972_s12, %s2536_s22  ;;  %p2540_p5 = scmp.lt.u32.totalorder %s2536_s22, %s2972_s12 }
  0x4b   :  { %p2542_p6 = pnand %p2540_p5, %p2537_p4 }
  0x4d   :  { %2545 = shalt.err (!%p2542_p6)
}
  0x4e   :  { %s2546_s26 = scalar_lea.vmem %s96_s21, 8192  ;;  %p2551_p8 = scmp.lt.s32.totalorder %s96_s21, %s96_s21 }
  0x4f   :  { %p2547_p7 = scmp.ne.s32.totalorder %s96_s21, %s2546_s26  ;;  %p2552_p9 = scmp.lt.s32.totalorder %s2546_s26, %s2546_s26 }
  0x51   :  { %p2553_p10 = por %p2552_p9, %p2551_p8 }
  0x53   :  { %p2554_p11 = pnand %p2553_p10, %p2547_p7 }
  0x55   :  { %2557 = shalt.err (!%p2554_p11)
}
  0x56   :  { %101 = dma.hbm_to_vmem [thread:$0]  %s2972_s12, 8192, %s96_s21, [#allocation9], %s2978_s20, %s2978_s20, %s2614_s29  }
  0x57   :  { %2602 = dma.done.wait [#allocation3], 256  }
  0x58   :  { %2603 = vsyncadd [#allocation3], 4294967040 }
  0x59   :  { %2604 = dma.done.wait [#allocation6], 2048  }
  0x5a   :  { %2605 = vsyncadd [#allocation6], 4294965248 }
  0x5b   :  { %2606 = dma.done.wait [#allocation9], 16384  }
  0x5c   :  { %2607 = vsyncadd [#allocation9], 4294950912  ;;  %v2623_v0 = vmov 0.0   ;;  %v2782_v1 = vld [vmem:[#allocation2] sm:$0xff]  ;;  %v2784_v2 = vld [vmem:[#allocation2 + $0x8] sm:$0xff]  ;;  %vm2624_vm0 = vmmov 0  }
  0x5d   :  { %2272 = vmatprep.subr.bf16.mxu0 %v2623_v0  ;;  %2292 = vmatprep.subr.bf16.mxu1 %v2623_v0  ;;  %v360_v3 = vmul.f32 %v2782_v1, %v2782_v1  ;;  %v361_v4 = vmul.f32 %v2784_v2, %v2784_v2  ;;  %v2352_v5 = vld [vmem:[#allocation5] sm:$0xff]   ;;  %v2353_v6 = vld [vmem:[#allocation5 + $0x8] sm:$0xff]   ;;  %v2354_v7 = vld [vmem:[#allocation5 + $0x10] sm:$0xff]   ;;  %vm620_vm1 = vcmask 1043456   ;;  %vm592_vm2 = vcmask 64512  }
  0x5e   :  { %356 = vadd.xlane.f32.xlu0 %v2782_v1  ;;  %2273 = vmatpush3.bf16.msra.mxu0 %v2352_v5  ;;  %v2355_v8 = vld [vmem:[#allocation5 + $0x18] sm:$0xff]   ;;  %v2356_v9 = vld [vmem:[#allocation5 + $0x20] sm:$0xff]   ;;  %v2357_v10 = vld [vmem:[#allocation5 + $0x28] sm:$0xff]  }
  0x5f   :  { %362 = vadd.xlane.f32.xlu1 %v360_v3  ;;  %2274 = vmatprep.subr.bf16.mxu0 %v2623_v0  ;;  %v2358_v11 = vld [vmem:[#allocation5 + $0x30] sm:$0xff]   ;;  %v2359_v12 = vld [vmem:[#allocation5 + $0x38] sm:$0xff]  }
  0x60   :  { %2288 = vmatprep.mubr.msk.bf16.mxu0 %vm2624_vm0, %v2623_v0  ;;  %2294 = vmatprep.mubr.msk.bf16.mxu1 %vm2624_vm0, %v2623_v0  ;;  %v2003_v30 = vld [vmem:[%s2962_s2] ss:$0 sm:$0xff]  ;;  %v2015_v60 = vld [vmem:[%s2961_s1 + $0x1] ss:$0 sm:$0xff] }
  0x61   :  { %v2004_v35 = vld [vmem:[%s2963_s3] ss:$0 sm:$0xff] }
  0x62   :  { %358 = vadd.xlane.f32.xlu0 %v2784_v2  ;;  %2275 = vmatpush3.bf16.msra.mxu0 %v2353_v6  ;;  %v2005_v40 = vld [vmem:[%s2967_s7] ss:$0 sm:$0xff] }
  0x63   :  { %364 = vadd.xlane.f32.xlu1 %v361_v4  ;;  %2276 = vmatprep.subr.bf16.mxu0 %v2623_v0  ;;  %v2014_v52 = vld [vmem:[%s2961_s1] ss:$0 sm:$0xff] }
  0x66   :  { %2277 = vmatpush3.bf16.msra.mxu0 %v2354_v7 }
  0x67   :  { %2278 = vmatprep.subr.bf16.mxu0 %v2623_v0 }
  0x6a   :  { %2279 = vmatpush3.bf16.msra.mxu0 %v2355_v8 }
  0x6b   :  { %2280 = vmatprep.subr.bf16.mxu0 %v2623_v0 }
  0x6e   :  { %2281 = vmatpush3.bf16.msra.mxu0 %v2356_v9 }
  0x6f   :  { %2282 = vmatprep.subr.bf16.mxu0 %v2623_v0 }
  0x72   :  { %2283 = vmatpush3.bf16.msra.mxu0 %v2357_v10 }
  0x73   :  { %2284 = vmatprep.subr.bf16.mxu0 %v2623_v0 }
  0x76   :  { %2285 = vmatpush3.bf16.msra.mxu0 %v2358_v11 }
  0x77   :  { %2286 = vmatprep.subr.bf16.mxu0 %v2623_v0 }
  0x7a   :  { %2287 = vmatpush3.bf16.msra.mxu0 %v2359_v12 }
  0x7b   :  { %2316 = vmatprep.subr.bf16.mxu0 %v2623_v0 }
  0xeb   :  { %v357_v13 = vpop.xlane.xlu0 %356 }
  0xec   :  { %v366_v14 = vmul.f32 0.03125, %v357_v13  ;;  %v363_v15 = vpop.xlane.xlu1 %362 }
  0xed   :  { %v368_v17 = vmul.f32 0.03125, %v363_v15 }
  0xee   :  { %v370_v16 = vmul.f32 %v366_v14, %v366_v14  ;;  %v374_v27 = vsub.f32 %v2782_v1, %v366_v14 }
  0xef   :  { %v359_v18 = vpop.xlane.xlu0 %358 }
  0xf0   :  { %v372_v19 = vsub.f32 %v368_v17, %v370_v16  ;;  %v367_v20 = vmul.f32 0.03125, %v359_v18  ;;  %v365_v21 = vpop.xlane.xlu1 %364  ;;  %v2360_v16 = vld [vmem:[#allocation7] sm:$0xff]   ;;  %v2361_v17 = vld [vmem:[#allocation7 + $0x8] sm:$0xff]   ;;  %v2362_v18 = vld [vmem:[#allocation7 + $0x10] sm:$0xff]  }
  0xf1   :  { %v369_v24 = vmul.f32 0.03125, %v365_v21 }
  0xf2   :  { %v376_v22 = vadd.f32 1e-05, %v372_v19  ;;  %v371_v23 = vmul.f32 %v367_v20, %v367_v20  ;;  %v375_v31 = vsub.f32 %v2784_v2, %v367_v20  ;;  %v2363_v19 = vld [vmem:[#allocation7 + $0x18] sm:$0xff]   ;;  %v2364_v20 = vld [vmem:[#allocation7 + $0x20] sm:$0xff]  }
  0xf4   :  { %2432 = vrsqrt.f32 %v376_v22  ;;  %v373_v25 = vsub.f32 %v369_v24, %v371_v23 }
  0xf6   :  { %v377_v26 = vadd.f32 1e-05, %v373_v25 }
  0xf8   :  { %2434 = vrsqrt.f32 %v377_v26 }
  0xfe   :  { %v2433_v28 = vpop.eup %2432 }
  0xff   :  { %v380_v29 = vmul.f32 %v2433_v28, %v374_v27 }
 0x101   :  { %v388_v34 = vmul.f32 %v2003_v30, %v380_v29  ;;  %v2365_v29 = vld [vmem:[#allocation7 + $0x28] sm:$0xff]  }
 0x102   :  { %v2435_v32 = vpop.eup %2434 }
 0x103   :  { %v381_v33 = vmul.f32 %v2435_v32, %v375_v31  ;;  %v396_v37 = vadd.f32 %v2004_v35, %v388_v34  ;;  %v2367_v31 = vld [vmem:[#allocation7 + $0x38] sm:$0xff]  }
 0x105   :  { %v389_v36 = vmul.f32 %v2003_v30, %v381_v33  ;;  %v2366_v30 = vld [vmem:[#allocation7 + $0x30] sm:$0xff]  }
 0x107   :  { %v397_v38 = vadd.f32 %v2004_v35, %v389_v36 }
 0x109   :  { %v398_v39 = vpack.c.bf16 %v397_v38, %v396_v37 }
 0x10b   :  { %2289 = vmatmul.mubr.bf16.vlgmr.msra.gmra.mrb[0].mxu0 %v398_v39 }
 0x10c   :  { %2332 = vmatprep.mubr.msk.bf16.mxu0 %vm2624_vm0, %v2623_v0  ;;  %2317 = vmatpush3.bf16.msra.mxu0 %v2360_v16  ;;  %v191_v16 = vld [vmem:[#allocation8 + $0xe8] sm:$0xff] }
 0x10d   :  { %2318 = vmatprep.subr.bf16.mxu0 %v2623_v0 }
 0x110   :  { %2319 = vmatpush3.bf16.msra.mxu0 %v2361_v17 }
 0x111   :  { %2320 = vmatprep.subr.bf16.mxu0 %v2623_v0 }
 0x114   :  { %2321 = vmatpush3.bf16.msra.mxu0 %v2362_v18 }
 0x115   :  { %2322 = vmatprep.subr.bf16.mxu0 %v2623_v0 }
 0x118   :  { %2323 = vmatpush3.bf16.msra.mxu0 %v2363_v19 }
 0x119   :  { %2324 = vmatprep.subr.bf16.mxu0 %v2623_v0 }
 0x11c   :  { %2325 = vmatpush3.bf16.msra.mxu0 %v2364_v20  ;;  %v194_v20 = vld [vmem:[#allocation8 + $0x100] sm:$0xff] }
 0x11d   :  { %2326 = vmatprep.subr.bf16.mxu0 %v2623_v0 }
 0x120   :  { %2327 = vmatpush3.bf16.msra.mxu0 %v2365_v29 }
 0x121   :  { %2328 = vmatprep.subr.bf16.mxu0 %v2623_v0 }
 0x124   :  { %2329 = vmatpush3.bf16.msra.mxu0 %v2366_v30 }
 0x125   :  { %2330 = vmatprep.subr.bf16.mxu0 %v2623_v0 }
 0x128   :  { %2331 = vmatpush3.bf16.msra.mxu0 %v2367_v31 }
 0x1de   :  { %v487_v41 = vpop.f32.mrb[0].mxu0 }
 0x1df   :  { %v488_v42 = vadd.f32 %v2005_v40, %v487_v41  ;;  %v2290_v43 = vpop.f32.mrb[1].mxu0  ;;  %v162_v41 = vld [vmem:[#allocation8] sm:$0xff] }
 0x1e0   :  { %v490_v44 = vpop.f32.mrb[2].mxu0  ;;  %v163_v43 = vld [vmem:[#allocation8 + $0x8] sm:$0xff] }
 0x1e1   :  { %v494_v45 = vpack.c.bf16 %v488_v42, %v488_v42  ;;  %v491_v46 = vadd.f32 %v2005_v40, %v490_v44  ;;  %v2291_v47 = vpop.f32.mrb[3].mxu0  ;;  %v166_v42 = vld [vmem:[#allocation8 + $0x20] sm:$0xff] }
 0x1e2   :  { %v2029_v44 = vcombine.low %v162_v41, %v166_v42 }
 0x1e3   :  { %v495_v48 = vpack.c.bf16 %v491_v46, %v491_v46  ;;  %2293 = vmatpush3.bf16.xpose.msra.mxu1 %v494_v45  ;;  %v622_v50 = vsel %vm620_vm1, %v494_v45, 0  ;;  %v167_v46 = vld [vmem:[#allocation8 + $0x28] sm:$0xff] }
 0x1e4   :  { %2298 = vmatprep.subr.bf16.mxu1 %v2623_v0  ;;  %v2031_v47 = vcombine.low %v163_v43, %v167_v46 }
 0x1e5   :  { %v2818_v49 = vsel %vm620_vm1, %v495_v48, 0 }
 0x1ea   :  { %2295 = vmatmul.mubr.bf16.vlgmr.msra.gmra.mrb[0].mxu1 %v494_v45  ;;  %v2030_v45 = vcombine.high %v162_v41, %v166_v42  ;;  %v218_v42 = vld [vmem:[#allocation8 + $0x1c0] sm:$0xff] }
 0x1eb   :  { %2299 = vmatpush3.bf16.xpose.msra.mxu1 %v495_v48  ;;  %2300 = vmatprep.mubr.msk.bf16.mxu1 %vm2624_vm0, %v2623_v0 }
 0x1ec   :  { %2304 = vmatprep.subr.bf16.mxu1 %v2623_v0 }
 0x1f2   :  { %2301 = vmatmul.mubr.bf16.vlgmr.msra.gmra.mrb[4].mxu1 %v495_v48  ;;  %v2018_v48 = vld [vmem:[%s2969_s9] ss:$0 sm:$0xff] }
 0x1f3   :  { %2305 = vmatpush3.bf16.msra.mxu1 %v622_v50  ;;  %2306 = vmatprep.mubr.msk.bf16.mxu1 %vm2624_vm0, %v2623_v0 }
 0x1f4   :  { %2310 = vmatprep.subr.bf16.mxu1 %v2623_v0 }
 0x2bd   :  { %v530_v51 = vpop.f32.mrb[0].mxu1 }
 0x2be   :  { %v576_v53 = vmul.f32 0.17677669, %v530_v51  ;;  %v2296_v54 = vpop.f32.mrb[1].mxu1 }
 0x2bf   :  { %v533_v55 = vpop.f32.mrb[2].mxu1 }
 0x2c0   :  { %v2297_v56 = vpop.f32.mrb[3].mxu1  ;;  %v590_v57 = vadd.f32 %v2014_v52, %v576_v53 }
 0x2c2   :  { %v593_v58 = vsel %vm592_vm2, %v590_v57, -inf }
 0x2c3   :  { %594 = vmax.xlane.f32.xlu0 %v593_v58 }
 0x2c5   :  { %v570_v59 = vpop.f32.mrb[4].mxu1 }
 0x2c6   :  { %v577_v61 = vmul.f32 0.17677669, %v570_v59  ;;  %v2302_v62 = vpop.f32.mrb[5].mxu1  ;;  %v170_v59 = vld [vmem:[#allocation8 + $0x40] sm:$0xff] }
 0x2c7   :  { %v573_v63 = vpop.f32.mrb[6].mxu1  ;;  %v175_v62 = vld [vmem:[#allocation8 + $0x68] sm:$0xff] }
 0x2c8   :  { %v2303_v3 = vpop.f32.mrb[7].mxu1  ;;  %v591_v4 = vadd.f32 %v2015_v60, %v577_v61  ;;  %v171_v60 = vld [vmem:[#allocation8 + $0x48] sm:$0xff] }
 0x2c9   :  { %v2040_v3 = vcombine.high %v171_v60, %v175_v62 }
 0x2ca   :  { %v596_v5 = vsel %vm592_vm2, %v591_v4, -inf }
 0x2cb   :  { %597 = vmax.xlane.f32.xlu1 %v596_v5  ;;  %v182_v5 = vld [vmem:[#allocation8 + $0xa0] sm:$0xff] }
 0x350   :  { %v595_v6 = vpop.xlane.xlu0 %594 }
 0x351   :  { %v599_v7 = vsub.f32 %v590_v57, %v595_v6  ;;  %v179_v6 = vld [vmem:[#allocation8 + $0x88] sm:$0xff] }
 0x353   :  { %v601_v8 = vmul.f32 1.442695, %v599_v7 }
 0x355   :  { %2436 = vpow2.f32 %v601_v8  ;;  %v183_v8 = vld [vmem:[#allocation8 + $0xa8] sm:$0xff] }
 0x358   :  { %v598_v9 = vpop.xlane.xlu1 %597 }
 0x359   :  { %v600_v10 = vsub.f32 %v591_v4, %v598_v9  ;;  %v178_v4 = vld [vmem:[#allocation8 + $0x80] sm:$0xff] }
 0x35a   :  { %v2046_v7 = vcombine.high %v178_v4, %v182_v5  ;;  %v2045_v9 = vcombine.low %v178_v4, %v182_v5 }
 0x35b   :  { %v603_v11 = vmul.f32 1.442695, %v600_v10  ;;  %v2047_v10 = vcombine.low %v179_v6, %v183_v8 }
 0x35d   :  { %2438 = vpow2.f32 %v603_v11  ;;  %v2048_v11 = vcombine.high %v179_v6, %v183_v8 }
 0x35f   :  { %v2437_v12 = vpop.eup %2436 }
 0x360   :  { %v605_v13 = vsel %vm592_vm2, %v2437_v12, 0.0 }
 0x361   :  { %606 = vadd.xlane.f32.xlu0 %v605_v13  ;;  %v190_v13 = vld [vmem:[#allocation8 + $0xe0] sm:$0xff] }
 0x367   :  { %v2439_v14 = vpop.eup %2438 }
 0x368   :  { %v608_v15 = vsel %vm592_vm2, %v2439_v14, 0.0 }
 0x369   :  { %609 = vadd.xlane.f32.xlu1 %v608_v15 }
 0x3ee   :  { %v607_v21 = vpop.xlane.xlu0 %606 }
 0x3ef   :  { %2440 = vrcp.f32 %v607_v21  ;;  %v198_v21 = vld [vmem:[#allocation8 + $0x120] sm:$0xff] }
 0x3f6   :  { %v610_v22 = vpop.xlane.xlu1 %609 }
 0x3f7   :  { %2442 = vrcp.f32 %v610_v22  ;;  %v195_v22 = vld [vmem:[#allocation8 + $0x108] sm:$0xff] }
 0x3f9   :  { %v2441_v23 = vpop.eup %2440 }
 0x3fa   :  { %v613_v24 = vmul.f32 %v2441_v23, %v2437_v12  ;;  %v186_v12 = vld [vmem:[#allocation8 + $0xc0] sm:$0xff]  ;;  %v2061_v23 = vcombine.low %v194_v20, %v198_v21 }
 0x3fb   :  { %v2054_v15 = vcombine.high %v186_v12, %v190_v13  ;;  %v2053_v17 = vcombine.low %v186_v12, %v190_v13 }
 0x3fc   :  { %1966 = vst.msk [vmem:[#allocation12] sm:$0xff] %vm592_vm2, %v613_v24  ;;  %v615_v25 = vpack.c.bf16 %v613_v24, %v613_v24  ;;  %v2062_v24 = vcombine.high %v194_v20, %v198_v21  ;;  %v2028_v21 = vld [vmem:[%s2965_s5] ss:$0 sm:$0xff] }
 0x3fe   :  { %2307 = vmatmul.mubr.msk.bf16.vlgmr.msra.gmra.mrb[8].mxu1 %vm592_vm2, %v615_v25  ;;  %v199_v25 = vld [vmem:[#allocation8 + $0x128] sm:$0xff] }
 0x3ff   :  { %2311 = vmatpush3.bf16.msra.mxu1 %v2818_v49  ;;  %2312 = vmatprep.mubr.msk.bf16.mxu1 %vm2624_vm0, %v2623_v0  ;;  %v2032_v0 = vcombine.high %v163_v43, %v167_v46  ;;  %v2063_v29 = vcombine.low %v195_v22, %v199_v25  ;;  %v2064_v30 = vcombine.high %v195_v22, %v199_v25  ;;  %v2867_v43 = vld [vmem:[#allocation8 + $0x10] sm:$0xff]  ;;  %v222_v46 = vld [vmem:[#allocation8 + $0x1e0] sm:$0xff]  ;;  %v173_v25 = vld [vmem:[#allocation8 + $0x58] sm:$0xff] }
 0x400   :  { %1212 = vmatprep.subr.bf16.mxu1 %v2030_v45 }
 0x401   :  { %v2443_v26 = vpop.eup %2442  ;;  %1255 = vmatprep.subr.bf16.mxu0 %v2032_v0  ;;  %v2873_v0 = vld [vmem:[#allocation8 + $0x18] sm:$0xff] }
 0x402   :  { %v614_v27 = vmul.f32 %v2443_v26, %v2439_v14  ;;  %v187_v14 = vld [vmem:[#allocation8 + $0xc8] sm:$0xff]  ;;  %v202_v26 = vld [vmem:[#allocation8 + $0x140] sm:$0xff] }
 0x403   :  { %v2055_v18 = vcombine.low %v187_v14, %v191_v16  ;;  %v2056_v19 = vcombine.high %v187_v14, %v191_v16 }
 0x404   :  { %1967 = vst.msk [vmem:[#allocation12 + $0x8] sm:$0xff] %vm592_vm2, %v614_v27  ;;  %v616_v28 = vpack.c.bf16 %v614_v27, %v614_v27  ;;  %v206_v27 = vld [vmem:[#allocation8 + $0x160] sm:$0xff] }
 0x405   :  { %v2070_v31 = vcombine.high %v202_v26, %v206_v27 }
 0x406   :  { %2313 = vmatmul.mubr.msk.bf16.vlgmr.msra.gmra.mrb[12].mxu1 %vm592_vm2, %v616_v28  ;;  %v2625_v28 = vmov 0  }
 0x407   :  { %1213 = vmatpush1.bf16.msra.mxu1 %v2029_v44  ;;  %1244 = vmatprep.mubr.bf16.mxu1 %v2625_v28  ;;  %v2869_v44 = vld [vmem:[#allocation8 + $0x30] sm:$0xff] }
 0x4d1   :  { %v658_v32 = vpop.f32.mrb[8].mxu1 }
 0x4d2   :  { %v2308_v33 = vpop.f32.mrb[9].mxu1 }
 0x4d3   :  { %v661_v34 = vpop.f32.mrb[10].mxu1  ;;  %v207_v33 = vld [vmem:[#allocation8 + $0x168] sm:$0xff] }
 0x4d4   :  { %v2309_v35 = vpop.f32.mrb[11].mxu1  ;;  %v210_v34 = vld [vmem:[#allocation8 + $0x180] sm:$0xff] }
 0x4d9   :  { %v704_v36 = vpop.f32.mrb[12].mxu1 }
 0x4da   :  { %v710_v37 = vpack.c.bf16 %v704_v36, %v658_v32  ;;  %v2314_v38 = vpop.f32.mrb[13].mxu1  ;;  %v203_v32 = vld [vmem:[#allocation8 + $0x148] sm:$0xff]  ;;  %v214_v36 = vld [vmem:[#allocation8 + $0x1a0] sm:$0xff] }
 0x4db   :  { %v707_v39 = vpop.f32.mrb[14].mxu1  ;;  %v2072_v35 = vcombine.high %v203_v32, %v207_v33  ;;  %v215_v38 = vld [vmem:[#allocation8 + $0x1a8] sm:$0xff]  ;;  %v2078_v41 = vcombine.high %v210_v34, %v214_v36 }
 0x4dc   :  { %v2315_v40 = vpop.f32.mrb[15].mxu1  ;;  %2333 = vmatmul.mubr.bf16.vlgmr.msra.gmra.mrb[4].mxu0 %v710_v37  ;;  %v211_v37 = vld [vmem:[#allocation8 + $0x188] sm:$0xff]  ;;  %v2069_v39 = vcombine.low %v202_v26, %v206_v27  ;;  %v177_v26 = vld [vmem:[#allocation8 + $0x78] sm:$0xff] }
 0x4dd   :  { %1256 = vmatpush1.bf16.msra.mxu0 %v2031_v47  ;;  %1287 = vmatprep.mubr.bf16.mxu0 %v2625_v28  ;;  %v2071_v40 = vcombine.low %v203_v32, %v207_v33  ;;  %v2080_v45 = vcombine.high %v211_v37, %v215_v38  ;;  %v2033_v47 = vcombine.low %v2867_v43, %v2869_v44  ;;  %v180_v33 = vld [vmem:[#allocation8 + $0x90] sm:$0xff] }
 0x4de   :  { %1257 = vmatprep.subr.bf16.mxu0 %v2040_v3  ;;  %v2044_v32 = vcombine.high %v173_v25, %v177_v26 }
 0x5af   :  { %v799_v49 = vpop.f32.mrb[4].mxu0 }
 0x5b0   :  { %v800_v50 = vadd.f32 %v2018_v48, %v799_v49  ;;  %v2334_v51 = vpop.f32.mrb[5].mxu0  ;;  %v219_v49 = vld [vmem:[#allocation8 + $0x1c8] sm:$0xff] }
 0x5b1   :  { %v802_v52 = vpop.f32.mrb[6].mxu0 }
 0x5b2   :  { %v2854_v53 = vadd.f32 %v800_v50, %v2782_v1  ;;  %v803_v54 = vadd.f32 %v2018_v48, %v802_v52  ;;  %v2335_v55 = vpop.f32.mrb[7].mxu0  ;;  %v174_v1 = vld [vmem:[#allocation8 + $0x60] sm:$0xff]  ;;  %v2875_v48 = vld [vmem:[#allocation8 + $0x38] sm:$0xff]  ;;  %v223_v50 = vld [vmem:[#allocation8 + $0x1e8] sm:$0xff]  ;;  %v2077_v52 = vcombine.low %v210_v34, %v214_v36 }
 0x5b3   :  { %v2038_v61 = vcombine.high %v170_v59, %v174_v1  ;;  %v2037_v63 = vcombine.low %v170_v59, %v174_v1  ;;  %v2035_v51 = vcombine.low %v2873_v0, %v2875_v48  ;;  %v2086_v55 = vcombine.high %v218_v42, %v222_v46  ;;  %v184_v34 = vld [vmem:[#allocation8 + $0xb0] sm:$0xff]  ;;  %v185_v36 = vld [vmem:[#allocation8 + $0xb8] sm:$0xff] }
 0x5b4   :  { %v2857_v56 = vadd.f32 %v803_v54, %v2784_v2  ;;  %808 = vadd.xlane.f32.xlu0 %v2854_v53  ;;  %v812_v57 = vmul.f32 %v2854_v53, %v2854_v53  ;;  %v2039_v2 = vcombine.low %v171_v60, %v175_v62  ;;  %v2079_v54 = vcombine.low %v211_v37, %v215_v38 }
 0x5b5   :  { %1214 = vmatprep.subr.bf16.mxu1 %v2038_v61  ;;  %v2087_v59 = vcombine.low %v219_v49, %v223_v50  ;;  %v2034_v1 = vcombine.high %v2867_v43, %v2869_v44  ;;  %v2036_v60 = vcombine.high %v2873_v0, %v2875_v48  ;;  %v2043_v38 = vcombine.low %v173_v25, %v177_v26  ;;  %v196_v48 = vld [vmem:[#allocation8 + $0x110] sm:$0xff]  ;;  %v2373_v25 = vld [vmem:[#allocation10 + $0xc8] sm:$0xff]  }
 0x5b6   :  { %810 = vadd.xlane.f32.xlu1 %v2857_v56  ;;  %v813_v58 = vmul.f32 %v2857_v56, %v2857_v56  ;;  %1215 = vmatpush1.bf16.msra.mxu1 %v2037_v63  ;;  %v2049_v0 = vcombine.low %v180_v33, %v184_v34  ;;  %v2374_v26 = vld [vmem:[#allocation10 + $0x8] sm:$0xff]  }
 0x5b7   :  { %1258 = vmatpush1.bf16.msra.mxu0 %v2039_v2  ;;  %1216 = vmatprep.subr.bf16.mxu1 %v2046_v7 }
 0x5b8   :  { %814 = vadd.xlane.f32.xlu0 %v812_v57  ;;  %1259 = vmatprep.subr.bf16.mxu0 %v2048_v11  ;;  %v2088_v57 = vcombine.high %v219_v49, %v223_v50  ;;  %v200_v49 = vld [vmem:[#allocation8 + $0x130] sm:$0xff]  ;;  %v197_v50 = vld [vmem:[#allocation8 + $0x118] sm:$0xff] }
 0x5ba   :  { %816 = vadd.xlane.f32.xlu1 %v813_v58  ;;  %1217 = vmatpush1.bf16.msra.mxu1 %v2045_v9  ;;  %v2085_v58 = vcombine.low %v218_v42, %v222_v46  ;;  %v192_v42 = vld [vmem:[#allocation8 + $0xf0] sm:$0xff]  ;;  %v193_v46 = vld [vmem:[#allocation8 + $0xf8] sm:$0xff] }
 0x5bb   :  { %1260 = vmatpush1.bf16.msra.mxu0 %v2047_v10  ;;  %1218 = vmatprep.subr.bf16.mxu1 %v2054_v15  ;;  %v2027_v15 = vld [vmem:[%s2964_s4] ss:$0 sm:$0xff] }
 0x5bc   :  { %1261 = vmatprep.subr.bf16.mxu0 %v2056_v19 }
 0x5be   :  { %1219 = vmatpush1.bf16.msra.mxu1 %v2053_v17 }
 0x5bf   :  { %1262 = vmatpush1.bf16.msra.mxu0 %v2055_v18  ;;  %1220 = vmatprep.subr.bf16.mxu1 %v2062_v24  ;;  %v176_v24 = vld [vmem:[#allocation8 + $0x70] sm:$0xff] }
 0x5c0   :  { %1263 = vmatprep.subr.bf16.mxu0 %v2064_v30 }
 0x5c2   :  { %1221 = vmatpush1.bf16.msra.mxu1 %v2061_v23  ;;  %v172_v23 = vld [vmem:[#allocation8 + $0x50] sm:$0xff] }
 0x5c3   :  { %1264 = vmatpush1.bf16.msra.mxu0 %v2063_v29  ;;  %1222 = vmatprep.subr.bf16.mxu1 %v2070_v31  ;;  %v2042_v31 = vcombine.high %v172_v23, %v176_v24  ;;  %v2041_v37 = vcombine.low %v172_v23, %v176_v24  ;;  %v2371_v23 = vld [vmem:[#allocation10 + $0x80] sm:$0xff]   ;;  %v2372_v24 = vld [vmem:[#allocation10 + $0x48] sm:$0xff]  }
 0x5c4   :  { %1265 = vmatprep.subr.bf16.mxu0 %v2072_v35  ;;  %v181_v35 = vld [vmem:[#allocation8 + $0x98] sm:$0xff] }
 0x5c5   :  { %v2051_v43 = vcombine.low %v181_v35, %v185_v36 }
 0x5c6   :  { %1223 = vmatpush1.bf16.msra.mxu1 %v2069_v39  ;;  %v2050_v39 = vcombine.high %v180_v33, %v184_v34  ;;  %v2379_v33 = vld [vmem:[#allocation10 + $0x90] sm:$0xff]   ;;  %v2380_v34 = vld [vmem:[#allocation10 + $0x58] sm:$0xff]  }
 0x5c7   :  { %1266 = vmatpush1.bf16.msra.mxu0 %v2071_v40  ;;  %1224 = vmatprep.subr.bf16.mxu1 %v2078_v41  ;;  %v2052_v40 = vcombine.high %v181_v35, %v185_v36  ;;  %v188_v41 = vld [vmem:[#allocation8 + $0xd0] sm:$0xff]  ;;  %v2381_v35 = vld [vmem:[#allocation10 + $0xd8] sm:$0xff]  }
 0x5c8   :  { %1267 = vmatprep.subr.bf16.mxu0 %v2080_v45  ;;  %v189_v45 = vld [vmem:[#allocation8 + $0xd8] sm:$0xff]  ;;  %v2058_v44 = vcombine.high %v188_v41, %v192_v42 }
 0x5c9   :  { %v2382_v36 = vld [vmem:[#allocation10 + $0x18] sm:$0xff]  }
 0x5ca   :  { %1225 = vmatpush1.bf16.msra.mxu1 %v2077_v52  ;;  %v2057_v52 = vcombine.low %v188_v41, %v192_v42  ;;  %v2388_v41 = vld [vmem:[#allocation10 + $0x68] sm:$0xff]  }
 0x5cb   :  { %1268 = vmatpush1.bf16.msra.mxu0 %v2079_v54  ;;  %1226 = vmatprep.subr.bf16.mxu1 %v2086_v55  ;;  %v2059_v54 = vcombine.low %v189_v45, %v193_v46  ;;  %v2066_v55 = vcombine.high %v196_v48, %v200_v49  ;;  %v2389_v42 = vld [vmem:[#allocation10 + $0xe8] sm:$0xff]  }
 0x5cc   :  { %1269 = vmatprep.subr.bf16.mxu0 %v2088_v57  ;;  %v204_v57 = vld [vmem:[#allocation8 + $0x150] sm:$0xff] }
 0x5ce   :  { %1227 = vmatpush1.bf16.msra.mxu1 %v2085_v58  ;;  %v208_v58 = vld [vmem:[#allocation8 + $0x170] sm:$0xff] }
 0x5cf   :  { %1270 = vmatpush1.bf16.msra.mxu0 %v2087_v59  ;;  %1298 = vmatprep.subr.bf16.mxu1 %v2034_v1  ;;  %v205_v59 = vld [vmem:[#allocation8 + $0x158] sm:$0xff] }
 0x5d0   :  { %1341 = vmatprep.subr.bf16.mxu0 %v2036_v60  ;;  %v209_v1 = vld [vmem:[#allocation8 + $0x178] sm:$0xff]  ;;  %v2065_v60 = vcombine.low %v196_v48, %v200_v49 }
 0x5d1   :  { %v2396_v48 = vld [vmem:[#allocation10 + $0x78] sm:$0xff]  }
 0x5d2   :  { %v2397_v49 = vld [vmem:[#allocation10 + $0xf8] sm:$0xff]  }
 0x641   :  { %v809_v61 = vpop.xlane.xlu0 %808 }
 0x642   :  { %v818_v62 = vmul.f32 0.03125, %v809_v61 }
 0x643   :  { %v811_v63 = vpop.xlane.xlu1 %810 }
 0x644   :  { %v819_v2 = vmul.f32 0.03125, %v811_v63  ;;  %v822_v4 = vmul.f32 %v818_v62, %v818_v62  ;;  %v826_v13 = vsub.f32 %v2854_v53, %v818_v62  ;;  %v2074_v62 = vcombine.high %v204_v57, %v208_v58 }
 0x645   :  { %v815_v3 = vpop.xlane.xlu0 %814  ;;  %v2076_v63 = vcombine.high %v205_v59, %v209_v1 }
 0x646   :  { %v820_v5 = vmul.f32 0.03125, %v815_v3  ;;  %v823_v7 = vmul.f32 %v819_v2, %v819_v2  ;;  %v827_v16 = vsub.f32 %v2857_v56, %v819_v2  ;;  %v212_v2 = vld [vmem:[#allocation8 + $0x190] sm:$0xff] }
 0x647   :  { %v817_v6 = vpop.xlane.xlu1 %816  ;;  %v216_v3 = vld [vmem:[#allocation8 + $0x1b0] sm:$0xff] }
 0x648   :  { %v824_v8 = vsub.f32 %v820_v5, %v822_v4  ;;  %v821_v9 = vmul.f32 0.03125, %v817_v6  ;;  %v213_v4 = vld [vmem:[#allocation8 + $0x198] sm:$0xff]  ;;  %v2073_v6 = vcombine.low %v204_v57, %v208_v58 }
 0x649   :  { %v217_v5 = vld [vmem:[#allocation8 + $0x1b8] sm:$0xff] }
 0x64a   :  { %v828_v10 = vadd.f32 1e-05, %v824_v8  ;;  %v825_v11 = vsub.f32 %v821_v9, %v823_v7  ;;  %v2075_v7 = vcombine.low %v205_v59, %v209_v1  ;;  %v2082_v8 = vcombine.high %v212_v2, %v216_v3  ;;  %v2909_v59 = vld [vmem:[%s2971_s11] sm:$0xff]  ;;  %s2626_s11 = smov [#allocation12]  }
 0x64b   :  { %v2084_v9 = vcombine.high %v213_v4, %v217_v5  ;;  %s1985_s23 = sshll.u32 %s2626_s11, 4  ;;  %s1986_s23 = int_to_ptr.vmem [resolvable:$true] %s1985_s23 }
 0x64c   :  { %2444 = vrsqrt.f32 %v828_v10  ;;  %v829_v12 = vadd.f32 1e-05, %v825_v11  ;;  %v220_v10 = vld [vmem:[#allocation8 + $0x1d0] sm:$0xff]  ;;  %s2558_s28 = scalar_lea.vmem %s1986_s23, 256  ;;  %p2563_p13 = scmp.lt.s32.totalorder %s1986_s23, %s1986_s23 }
 0x64d   :  { %v224_v11 = vld [vmem:[#allocation8 + $0x1f0] sm:$0xff]  ;;  %p2559_p12 = scmp.ne.s32.totalorder %s1986_s23, %s2558_s28  ;;  %p2564_p0 = scmp.lt.s32.totalorder %s2558_s28, %s2558_s28 }
 0x64e   :  { %2446 = vrsqrt.f32 %v829_v12  ;;  %v221_v12 = vld [vmem:[#allocation8 + $0x1d8] sm:$0xff] }
 0x64f   :  { %p2565_p1 = por %p2564_p0, %p2563_p13 }
 0x651   :  { %p2566_p2 = pnand %p2565_p1, %p2559_p12 }
 0x656   :  { %v2445_v14 = vpop.eup %2444 }
 0x657   :  { %v832_v17 = vmul.f32 %v2445_v14, %v826_v13  ;;  %v225_v13 = vld [vmem:[#allocation8 + $0x1f8] sm:$0xff]  ;;  %v2081_v14 = vcombine.low %v212_v2, %v216_v3 }
 0x658   :  { %v2447_v18 = vpop.eup %2446 }
 0x659   :  { %v833_v19 = vmul.f32 %v2447_v18, %v827_v16  ;;  %v840_v20 = vmul.f32 %v2027_v15, %v832_v17  ;;  %v2090_v16 = vcombine.high %v220_v10, %v224_v11  ;;  %v2092_v17 = vcombine.high %v221_v12, %v225_v13 }
 0x65a   :  { %v2089_v18 = vcombine.low %v220_v10, %v224_v11 }
 0x65b   :  { %v841_v22 = vmul.f32 %v2027_v15, %v833_v19  ;;  %v848_v27 = vadd.f32 %v2028_v21, %v840_v20  ;;  %v2083_v15 = vcombine.low %v213_v4, %v217_v5  ;;  %v2091_v19 = vcombine.low %v221_v12, %v225_v13  ;;  %v2368_v20 = vld [vmem:[#allocation10 + $0x40] sm:$0xff]  }
 0x65d   :  { %v849_v29 = vadd.f32 %v2028_v21, %v841_v22  ;;  %v2369_v21 = vld [vmem:[#allocation10 + $0xc0] sm:$0xff]  }
 0x65e   :  { %v2370_v22 = vld [vmem:[#allocation10] sm:$0xff]  }
 0x65f   :  { %v2891_v30 = vpack.c.bf16 %v849_v29, %v848_v27  ;;  %v2375_v27 = vld [vmem:[#allocation10 + $0x88] sm:$0xff]   ;;  %v2376_v29 = vld [vmem:[#allocation10 + $0x50] sm:$0xff]  }
 0x661   :  { %1245 = vmatmul.mubr.bf16.vlgmr.msra.gmra.mrb[16].mxu1 %v2891_v30  ;;  %1288 = vmatmul.mubr.bf16.vlgmr.msra.gmra.mrb[8].mxu0 %v2891_v30 }
 0x662   :  { %1299 = vmatpush1.bf16.msra.mxu1 %v2033_v47  ;;  %1342 = vmatpush1.bf16.msra.mxu0 %v2035_v51  ;;  %v2060_v47 = vcombine.high %v189_v45, %v193_v46  ;;  %v201_v51 = vld [vmem:[#allocation8 + $0x138] sm:$0xff]  ;;  %v2390_v45 = vld [vmem:[#allocation10 + $0x28] sm:$0xff]  }
 0x663   :  { %1300 = vmatprep.subr.bf16.mxu1 %v2042_v31  ;;  %1343 = vmatprep.subr.bf16.mxu0 %v2044_v32  ;;  %v2067_v61 = vcombine.low %v197_v50, %v201_v51  ;;  %v2377_v31 = vld [vmem:[#allocation10 + $0xd0] sm:$0xff]   ;;  %v2391_v46 = vld [vmem:[#allocation10 + $0xa8] sm:$0xff]  }
 0x664   :  { %1330 = vmatprep.mubr.bf16.mxu1 %v2625_v28  ;;  %1373 = vmatprep.mubr.bf16.mxu0 %v2625_v28  ;;  %v2068_v28 = vcombine.high %v197_v50, %v201_v51  ;;  %v2378_v32 = vld [vmem:[#allocation10 + $0x10] sm:$0xff]   ;;  %v2398_v50 = vld [vmem:[#allocation10 + $0x38] sm:$0xff]  }
 0x665   :  { %v2399_v51 = vld [vmem:[#allocation10 + $0xb8] sm:$0xff]  }
 0x666   :  { %1301 = vmatpush1.bf16.msra.mxu1 %v2041_v37  ;;  %1344 = vmatpush1.bf16.msra.mxu0 %v2043_v38  ;;  %v2384_v37 = vld [vmem:[#allocation10 + $0x60] sm:$0xff]  }
 0x667   :  { %1302 = vmatprep.subr.bf16.mxu1 %v2050_v39  ;;  %1345 = vmatprep.subr.bf16.mxu0 %v2052_v40  ;;  %v2385_v38 = vld [vmem:[#allocation10 + $0xe0] sm:$0xff]  }
 0x668   :  { %v2386_v39 = vld [vmem:[#allocation10 + $0x20] sm:$0xff]  }
 0x669   :  { %v2387_v40 = vld [vmem:[#allocation10 + $0xa0] sm:$0xff]  }
 0x66a   :  { %1303 = vmatpush1.bf16.msra.mxu1 %v2049_v0  ;;  %1346 = vmatpush1.bf16.msra.mxu0 %v2051_v43  ;;  %v2392_v0 = vld [vmem:[#allocation10 + $0x70] sm:$0xff]  }
 0x66b   :  { %1304 = vmatprep.subr.bf16.mxu1 %v2058_v44  ;;  %1347 = vmatprep.subr.bf16.mxu0 %v2060_v47  ;;  %v2393_v43 = vld [vmem:[#allocation10 + $0xf0] sm:$0xff]  }
 0x66c   :  { %v2394_v44 = vld [vmem:[#allocation10 + $0x30] sm:$0xff]  }
 0x66d   :  { %v2395_v47 = vld [vmem:[#allocation10 + $0xb0] sm:$0xff]  }
 0x66e   :  { %1305 = vmatpush1.bf16.msra.mxu1 %v2057_v52  ;;  %1348 = vmatpush1.bf16.msra.mxu0 %v2059_v54  ;;  %v2400_v52 = vld [vmem:[#allocation10 + $0x140] sm:$0xff]  }
 0x66f   :  { %1306 = vmatprep.subr.bf16.mxu1 %v2066_v55  ;;  %1349 = vmatprep.subr.bf16.mxu0 %v2068_v28  ;;  %v2401_v54 = vld [vmem:[#allocation10 + $0x1c0] sm:$0xff]   ;;  %v852_v55 = vlaneseq }
 0x671   :  { %v2902_v28 = vshrl.u32 %v852_v55, 7 }
 0x672   :  { %1307 = vmatpush1.bf16.msra.mxu1 %v2065_v60  ;;  %1350 = vmatpush1.bf16.msra.mxu0 %v2067_v61 }
 0x673   :  { %1308 = vmatprep.subr.bf16.mxu1 %v2074_v62  ;;  %1351 = vmatprep.subr.bf16.mxu0 %v2076_v63  ;;  %v854_v57 = vsub.s32 0, %v2902_v28  ;;  %v862_v58 = vsub.s32 2, %v2902_v28  ;;  %v858_v1 = vsub.s32 1, %v2902_v28  ;;  %v866_v60 = vsub.s32 3, %v2902_v28 }
 0x674   :  { %v882_v55 = vsub.s32 7, %v2902_v28 }
 0x675   :  { %v855_v61 = vrot.slane %v2909_v59, %v854_v57  ;;  %v863_v62 = vrot.slane %v2909_v59, %v862_v58  ;;  %v859_v63 = vrot.slane %v2909_v59, %v858_v1  ;;  %v867_v2 = vrot.slane %v2909_v59, %v866_v60  ;;  %v2422_v57 = vld [vmem:[#allocation10 + $0x128] sm:$0xff]  }
 0x676   :  { %1309 = vmatpush1.bf16.msra.mxu1 %v2073_v6  ;;  %1352 = vmatpush1.bf16.msra.mxu0 %v2075_v7  ;;  %v2423_v58 = vld [vmem:[#allocation10 + $0x1a8] sm:$0xff]  }
 0x677   :  { %1310 = vmatprep.subr.bf16.mxu1 %v2082_v8  ;;  %1353 = vmatprep.subr.bf16.mxu0 %v2084_v9 }
 0x67a   :  { %1311 = vmatpush1.bf16.msra.mxu1 %v2081_v14  ;;  %1354 = vmatpush1.bf16.msra.mxu0 %v2083_v15 }
 0x67b   :  { %1312 = vmatprep.subr.bf16.mxu1 %v2090_v16  ;;  %1355 = vmatprep.subr.bf16.mxu0 %v2092_v17 }
 0x67e   :  { %1313 = vmatpush1.bf16.msra.mxu1 %v2089_v18  ;;  %1356 = vmatpush1.bf16.msra.mxu0 %v2091_v19 }
 0x67f   :  { %2184 = vmatprep.subr.bf16.mxu1 %v2368_v20  ;;  %2206 = vmatprep.subr.bf16.mxu0 %v2369_v21 }
 0x681   :  { %1331 = vmatmul.mubr.bf16.vlgmr.msra.gmra.mrb[20].mxu1 %v2891_v30  ;;  %1374 = vmatmul.mubr.bf16.vlgmr.msra.gmra.mrb[12].mxu0 %v2891_v30  ;;  %v2383_v30 = vld [vmem:[#allocation10 + $0x98] sm:$0xff]  }
 0x682   :  { %2185 = vmatpush3.bf16.msra.mxu1 %v2370_v22  ;;  %2207 = vmatpush3.bf16.msra.mxu0 %v2371_v23 }
 0x683   :  { %2186 = vmatprep.subr.bf16.mxu1 %v2372_v24  ;;  %2208 = vmatprep.subr.bf16.mxu0 %v2373_v25 }
 0x686   :  { %2187 = vmatpush3.bf16.msra.mxu1 %v2374_v26  ;;  %2209 = vmatpush3.bf16.msra.mxu0 %v2375_v27 }
 0x687   :  { %2188 = vmatprep.subr.bf16.mxu1 %v2376_v29  ;;  %2210 = vmatprep.subr.bf16.mxu0 %v2377_v31 }
 0x68a   :  { %2189 = vmatpush3.bf16.msra.mxu1 %v2378_v32  ;;  %2211 = vmatpush3.bf16.msra.mxu0 %v2379_v33  ;;  %v2402_v33 = vld [vmem:[#allocation10 + $0x100] sm:$0xff]  }
 0x68b   :  { %2190 = vmatprep.subr.bf16.mxu1 %v2380_v34  ;;  %2212 = vmatprep.subr.bf16.mxu0 %v2381_v35  ;;  %v2403_v34 = vld [vmem:[#allocation10 + $0x180] sm:$0xff]   ;;  %v2404_v35 = vld [vmem:[#allocation10 + $0x148] sm:$0xff]  }
 0x68e   :  { %2191 = vmatpush3.bf16.msra.mxu1 %v2382_v36  ;;  %2213 = vmatpush3.bf16.msra.mxu0 %v2383_v30  ;;  %v2405_v36 = vld [vmem:[#allocation10 + $0x1c8] sm:$0xff]  }
 0x68f   :  { %2192 = vmatprep.subr.bf16.mxu1 %v2384_v37  ;;  %2214 = vmatprep.subr.bf16.mxu0 %v2385_v38  ;;  %v2406_v30 = vld [vmem:[#allocation10 + $0x108] sm:$0xff]   ;;  %v2408_v38 = vld [vmem:[#allocation10 + $0x150] sm:$0xff]  }
 0x690   :  { %v2407_v37 = vld [vmem:[#allocation10 + $0x188] sm:$0xff]  }
 0x692   :  { %2193 = vmatpush3.bf16.msra.mxu1 %v2386_v39  ;;  %2215 = vmatpush3.bf16.msra.mxu0 %v2387_v40  ;;  %v2409_v39 = vld [vmem:[#allocation10 + $0x1d0] sm:$0xff]  }
 0x693   :  { %2194 = vmatprep.subr.bf16.mxu1 %v2388_v41  ;;  %2216 = vmatprep.subr.bf16.mxu0 %v2389_v42  ;;  %v2410_v40 = vld [vmem:[#allocation10 + $0x110] sm:$0xff]   ;;  %v2412_v42 = vld [vmem:[#allocation10 + $0x158] sm:$0xff]  }
 0x694   :  { %v2411_v41 = vld [vmem:[#allocation10 + $0x190] sm:$0xff]  }
 0x696   :  { %2195 = vmatpush3.bf16.msra.mxu1 %v2390_v45  ;;  %2217 = vmatpush3.bf16.msra.mxu0 %v2391_v46  ;;  %v2413_v45 = vld [vmem:[#allocation10 + $0x1d8] sm:$0xff]  }
 0x697   :  { %2196 = vmatprep.subr.bf16.mxu1 %v2392_v0  ;;  %2218 = vmatprep.subr.bf16.mxu0 %v2393_v43  ;;  %v2414_v46 = vld [vmem:[#allocation10 + $0x118] sm:$0xff]   ;;  %v2416_v43 = vld [vmem:[#allocation10 + $0x160] sm:$0xff]  }
 0x698   :  { %v2415_v0 = vld [vmem:[#allocation10 + $0x198] sm:$0xff]  }
 0x69a   :  { %2197 = vmatpush3.bf16.msra.mxu1 %v2394_v44  ;;  %2219 = vmatpush3.bf16.msra.mxu0 %v2395_v47  ;;  %v2417_v44 = vld [vmem:[#allocation10 + $0x1e0] sm:$0xff]  }
 0x69b   :  { %2198 = vmatprep.subr.bf16.mxu1 %v2396_v48  ;;  %2220 = vmatprep.subr.bf16.mxu0 %v2397_v49  ;;  %v2418_v47 = vld [vmem:[#allocation10 + $0x120] sm:$0xff]   ;;  %v2420_v49 = vld [vmem:[#allocation10 + $0x168] sm:$0xff]  }
 0x69c   :  { %v2419_v48 = vld [vmem:[#allocation10 + $0x1a0] sm:$0xff]  }
 0x69e   :  { %2199 = vmatpush3.bf16.msra.mxu1 %v2398_v50  ;;  %2221 = vmatpush3.bf16.msra.mxu0 %v2399_v51  ;;  %v2421_v50 = vld [vmem:[#allocation10 + $0x1e8] sm:$0xff]   ;;  %v870_v51 = vsub.s32 4, %v2902_v28 }
 0x69f   :  { %2228 = vmatprep.subr.bf16.mxu1 %v2400_v52  ;;  %2250 = vmatprep.subr.bf16.mxu0 %v2401_v54  ;;  %v878_v52 = vsub.s32 6, %v2902_v28  ;;  %v874_v54 = vsub.s32 5, %v2902_v28  ;;  %v2426_v28 = vld [vmem:[#allocation10 + $0x130] sm:$0xff]  }
 0x6a0   :  { %v871_v1 = vrot.slane %v2909_v59, %v870_v51 }
 0x6a1   :  { %v879_v60 = vrot.slane %v2909_v59, %v878_v52 }
 0x734   :  { %v1246_v3 = vpop.f32.mrb[16].mxu1  ;;  %v1289_v4 = vpop.f32.mrb[8].mxu0 }
 0x735   :  { %v1247_v5 = vadd.f32 %v1246_v3, %v855_v61  ;;  %v1290_v6 = vadd.f32 %v1289_v4, %v863_v62  ;;  %v1248_v7 = vpop.f32.mrb[17].mxu1  ;;  %v1291_v8 = vpop.f32.mrb[9].mxu0 }
 0x736   :  { %v1249_v9 = vadd.f32 %v1248_v7, %v859_v63  ;;  %v1292_v10 = vadd.f32 %v1291_v8, %v867_v2  ;;  %v1250_v11 = vpop.f32.mrb[18].mxu1  ;;  %v1293_v12 = vpop.f32.mrb[10].mxu0 }
 0x737   :  { %v1251_v13 = vadd.f32 %v1250_v11, %v855_v61  ;;  %v1294_v14 = vadd.f32 %v1293_v12, %v863_v62  ;;  %v1252_v15 = vpop.f32.mrb[19].mxu1  ;;  %v1295_v16 = vpop.f32.mrb[11].mxu0  ;;  %v1384_v19 = vmax.f32 %v1247_v5, 0.0  ;;  %v1386_v20 = vmax.f32 %v1290_v6, 0.0  ;;  %v2424_v61 = vld [vmem:[#allocation10 + $0x170] sm:$0xff]   ;;  %v2429_v11 = vld [vmem:[#allocation10 + $0x1f8] sm:$0xff]  }
 0x738   :  { %v1253_v17 = vadd.f32 %v1252_v15, %v859_v63  ;;  %v1296_v18 = vadd.f32 %v1295_v16, %v867_v2  ;;  %v1385_v23 = vmax.f32 %v1249_v9, 0.0  ;;  %v1387_v24 = vmax.f32 %v1292_v10, 0.0  ;;  %v2425_v62 = vld [vmem:[#allocation10 + $0x1f0] sm:$0xff]   ;;  %v2428_v10 = vld [vmem:[#allocation10 + $0x178] sm:$0xff]  }
 0x739   :  { %v1392_v21 = vmax.f32 %v1251_v13, 0.0  ;;  %v1394_v22 = vmax.f32 %v1294_v14, 0.0  ;;  %v875_v63 = vrot.slane %v2909_v59, %v874_v54  ;;  %v883_v2 = vrot.slane %v2909_v59, %v882_v55  ;;  %v2427_v5 = vld [vmem:[#allocation10 + $0x1b0] sm:$0xff]  }
 0x73a   :  { %v1393_v25 = vmax.f32 %v1253_v17, 0.0  ;;  %v1395_v26 = vmax.f32 %v1296_v18, 0.0 }
 0x73b   :  { %v1400_v27 = vpack.c.bf16 %v1392_v21, %v1384_v19  ;;  %v1402_v29 = vpack.c.bf16 %v1394_v22, %v1386_v20  ;;  %v2430_v21 = vld [vmem:[#allocation10 + $0x138] sm:$0xff]  }
 0x73c   :  { %v1401_v31 = vpack.c.bf16 %v1393_v25, %v1385_v23  ;;  %v1403_v32 = vpack.c.bf16 %v1395_v26, %v1387_v24  ;;  %v2431_v22 = vld [vmem:[#allocation10 + $0x1b8] sm:$0xff]  }
 0x73e   :  { %1830 = vmatprep.mubr.bf16.mxu1 %v1401_v31  ;;  %1871 = vmatprep.mubr.bf16.mxu0 %v1403_v32 }
 0x73f   :  { %1831 = vmatmul.mubr.bf16.vlgmr.msra.gmra.mrb[24].mxu1 %v1400_v27  ;;  %1872 = vmatmul.mubr.bf16.vlgmr.msra.gmra.mrb[16].mxu0 %v1402_v29 }
 0x740   :  { %2229 = vmatpush3.bf16.msra.mxu1 %v2402_v33  ;;  %2251 = vmatpush3.bf16.msra.mxu0 %v2403_v34 }
 0x741   :  { %2230 = vmatprep.subr.bf16.mxu1 %v2404_v35  ;;  %2252 = vmatprep.subr.bf16.mxu0 %v2405_v36 }
 0x744   :  { %2231 = vmatpush3.bf16.msra.mxu1 %v2406_v30  ;;  %2253 = vmatpush3.bf16.msra.mxu0 %v2407_v37 }
 0x745   :  { %2232 = vmatprep.subr.bf16.mxu1 %v2408_v38  ;;  %2254 = vmatprep.subr.bf16.mxu0 %v2409_v39 }
 0x748   :  { %2233 = vmatpush3.bf16.msra.mxu1 %v2410_v40  ;;  %2255 = vmatpush3.bf16.msra.mxu0 %v2411_v41 }
 0x749   :  { %2234 = vmatprep.subr.bf16.mxu1 %v2412_v42  ;;  %2256 = vmatprep.subr.bf16.mxu0 %v2413_v45 }
 0x74c   :  { %2235 = vmatpush3.bf16.msra.mxu1 %v2414_v46  ;;  %2257 = vmatpush3.bf16.msra.mxu0 %v2415_v0 }
 0x74d   :  { %2236 = vmatprep.subr.bf16.mxu1 %v2416_v43  ;;  %2258 = vmatprep.subr.bf16.mxu0 %v2417_v44 }
 0x750   :  { %2237 = vmatpush3.bf16.msra.mxu1 %v2418_v47  ;;  %2259 = vmatpush3.bf16.msra.mxu0 %v2419_v48 }
 0x751   :  { %2238 = vmatprep.subr.bf16.mxu1 %v2420_v49  ;;  %2260 = vmatprep.subr.bf16.mxu0 %v2421_v50 }
 0x754   :  { %v1332_v3 = vpop.f32.mrb[20].mxu1  ;;  %v1375_v4 = vpop.f32.mrb[12].mxu0  ;;  %2239 = vmatpush3.bf16.msra.mxu1 %v2422_v57  ;;  %2261 = vmatpush3.bf16.msra.mxu0 %v2423_v58 }
 0x755   :  { %v1333_v6 = vadd.f32 %v1332_v3, %v871_v1  ;;  %v1376_v7 = vadd.f32 %v1375_v4, %v879_v60  ;;  %v1334_v8 = vpop.f32.mrb[21].mxu1  ;;  %v1377_v9 = vpop.f32.mrb[13].mxu0  ;;  %2240 = vmatprep.subr.bf16.mxu1 %v2424_v61  ;;  %2262 = vmatprep.subr.bf16.mxu0 %v2425_v62 }
 0x756   :  { %v1335_v12 = vadd.f32 %v1334_v8, %v875_v63  ;;  %v1378_v13 = vadd.f32 %v1377_v9, %v883_v2  ;;  %v1336_v14 = vpop.f32.mrb[22].mxu1  ;;  %v1379_v15 = vpop.f32.mrb[14].mxu0 }
 0x757   :  { %v1337_v16 = vadd.f32 %v1336_v14, %v871_v1  ;;  %v1380_v59 = vadd.f32 %v1379_v15, %v879_v60  ;;  %v1338_v17 = vpop.f32.mrb[23].mxu1  ;;  %v1381_v18 = vpop.f32.mrb[15].mxu0  ;;  %v1388_v23 = vmax.f32 %v1333_v6, 0.0  ;;  %v1390_v24 = vmax.f32 %v1376_v7, 0.0 }
 0x758   :  { %v1339_v19 = vadd.f32 %v1338_v17, %v875_v63  ;;  %v1382_v20 = vadd.f32 %v1381_v18, %v883_v2  ;;  %2241 = vmatpush3.bf16.msra.mxu1 %v2426_v28  ;;  %2263 = vmatpush3.bf16.msra.mxu0 %v2427_v5  ;;  %v1389_v27 = vmax.f32 %v1335_v12, 0.0  ;;  %v1391_v29 = vmax.f32 %v1378_v13, 0.0 }
 0x759   :  { %v1396_v25 = vmax.f32 %v1337_v16, 0.0  ;;  %v1398_v26 = vmax.f32 %v1380_v59, 0.0  ;;  %2242 = vmatprep.subr.bf16.mxu1 %v2428_v10  ;;  %2264 = vmatprep.subr.bf16.mxu0 %v2429_v11 }
 0x75a   :  { %v1397_v31 = vmax.f32 %v1339_v19, 0.0  ;;  %v1399_v32 = vmax.f32 %v1382_v20, 0.0 }
 0x75b   :  { %v1404_v33 = vpack.c.bf16 %v1396_v25, %v1388_v23  ;;  %v1406_v34 = vpack.c.bf16 %v1398_v26, %v1390_v24 }
 0x75c   :  { %v1405_v35 = vpack.c.bf16 %v1397_v31, %v1389_v27  ;;  %v1407_v36 = vpack.c.bf16 %v1399_v32, %v1391_v29  ;;  %2243 = vmatpush3.bf16.msra.mxu1 %v2430_v21  ;;  %2265 = vmatpush3.bf16.msra.mxu0 %v2431_v22 }
 0x75e   :  { %1912 = vmatprep.mubr.bf16.mxu1 %v1405_v35  ;;  %1953 = vmatprep.mubr.bf16.mxu0 %v1407_v36 }
 0x75f   :  { %1913 = vmatmul.mubr.bf16.vlgmr.msra.gmra.mrb[28].mxu1 %v1404_v33  ;;  %1954 = vmatmul.mubr.bf16.vlgmr.msra.gmra.mrb[20].mxu0 %v1406_v34 }
 0x760   :  { %2569 = shalt.err (!%p2566_p2)
}
 0x761   :  { %s2570_s26 = scalar_lea.hbm %s2975_s15, 256 }
 0x762   :  { %p2571_p3 = scmp.ne.s32.totalorder %s2975_s15, %s2570_s26  ;;  %p2574_p4 = scmp.lt.u32.totalorder %s2570_s26, %s2975_s15 }
 0x764   :  { %p2576_p5 = pnand %p2574_p4, %p2571_p3 }
 0x766   :  { %2579 = shalt.err (!%p2576_p5)
}
 0x767   :  { %1991 = dma.vmem_to_hbm [thread:$0]  %s1986_s23, 256, %s2975_s15, [#allocation13], %s2619_s10, %s2619_s10, %s2620_s18  }
 0x768   :  { %v2093_v38 = vld [vmem:[%s2973_s13] ss:$0 sm:$0xff]  ;;  %s2627_s13 = smov [#allocation11]  }
 0x769   :  { %s1973_s15 = sshll.u32 %s2627_s13, 4  ;;  %s1974_s15 = int_to_ptr.vmem [resolvable:$true] %s1973_s15 }
 0x76a   :  { %s2580_s2 = scalar_lea.vmem %s1974_s15, 256  ;;  %p2585_p7 = scmp.lt.s32.totalorder %s1974_s15, %s1974_s15 }
 0x76b   :  { %p2581_p6 = scmp.ne.s32.totalorder %s1974_s15, %s2580_s2  ;;  %p2586_p8 = scmp.lt.s32.totalorder %s2580_s2, %s2580_s2 }
 0x76d   :  { %p2587_p9 = por %p2586_p8, %p2585_p7 }
 0x76f   :  { %p2588_p10 = pnand %p2587_p9, %p2581_p6 }
 0x812   :  { %v2200_v30 = vpop.f32.mrb[24].mxu1  ;;  %v2222_v37 = vpop.f32.mrb[16].mxu0 }
 0x813   :  { %v2201_v39 = vpop.f32.mrb[25].mxu1  ;;  %v2223_v40 = vpop.f32.mrb[17].mxu0 }
 0x814   :  { %v2202_v41 = vadd.f32 %v2201_v39, %v2200_v30  ;;  %v2224_v42 = vadd.f32 %v2223_v40, %v2222_v37  ;;  %v2203_v45 = vpop.f32.mrb[26].mxu1  ;;  %v2225_v46 = vpop.f32.mrb[18].mxu0 }
 0x815   :  { %v2204_v0 = vpop.f32.mrb[27].mxu1  ;;  %v2226_v43 = vpop.f32.mrb[19].mxu0 }
 0x816   :  { %v1833_v44 = vadd.f32 %v2202_v41, %v2093_v38  ;;  %v2205_v47 = vadd.f32 %v2204_v0, %v2203_v45  ;;  %v2227_v48 = vadd.f32 %v2226_v43, %v2225_v46 }
 0x818   :  { %v1874_v49 = vadd.f32 %v2224_v42, %v1833_v44  ;;  %v1836_v50 = vadd.f32 %v2205_v47, %v2093_v38 }
 0x81a   :  { %v1877_v51 = vadd.f32 %v2227_v48, %v1836_v50 }
 0x832   :  { %v2244_v52 = vpop.f32.mrb[28].mxu1  ;;  %v2266_v54 = vpop.f32.mrb[20].mxu0 }
 0x833   :  { %v2245_v55 = vpop.f32.mrb[29].mxu1  ;;  %v2267_v57 = vpop.f32.mrb[21].mxu0 }
 0x834   :  { %v2246_v58 = vadd.f32 %v2245_v55, %v2244_v52  ;;  %v2268_v1 = vadd.f32 %v2267_v57, %v2266_v54  ;;  %v2247_v60 = vpop.f32.mrb[30].mxu1  ;;  %v2269_v61 = vpop.f32.mrb[22].mxu0 }
 0x835   :  { %v2248_v62 = vpop.f32.mrb[31].mxu1  ;;  %v2270_v63 = vpop.f32.mrb[23].mxu0 }
 0x836   :  { %v1915_v2 = vadd.f32 %v2246_v58, %v1874_v49  ;;  %v2249_v3 = vadd.f32 %v2248_v62, %v2247_v60  ;;  %v2271_v4 = vadd.f32 %v2270_v63, %v2269_v61 }
 0x838   :  { %v1956_v28 = vadd.f32 %v2268_v1, %v1915_v2  ;;  %v1918_v5 = vadd.f32 %v2249_v3, %v1877_v51 }
 0x83a   :  { %v1962_v6 = vadd.f32 %v1956_v28, %v2854_v53  ;;  %v1959_v7 = vadd.f32 %v2271_v4, %v1918_v5 }
 0x83c   :  { %1964 = vst [vmem:[#allocation11] sm:$0xff] %v1962_v6  ;;  %v1963_v8 = vadd.f32 %v1959_v7, %v2857_v56 }
 0x83e   :  { %1965 = vst [vmem:[#allocation11 + $0x8] sm:$0xff] %v1963_v8 }
 0x83f   :  { %2591 = shalt.err (!%p2588_p10)
}
 0x840   :  { %s2592_s6 = scalar_lea.hbm %s2974_s14, 256 }
 0x841   :  { %p2593_p11 = scmp.ne.s32.totalorder %s2974_s14, %s2592_s6  ;;  %p2596_p12 = scmp.lt.u32.totalorder %s2592_s6, %s2974_s14 }
 0x843   :  { %p2598_p13 = pnand %p2596_p12, %p2593_p11 }
 0x845   :  { %2601 = shalt.err (!%p2598_p13)
}
 0x846   :  { %1979 = dma.vmem_to_hbm [thread:$0]  %s1974_s15, 256, %s2974_s14, [#allocation4], %s2619_s10, %s2619_s10, %s2620_s18  }
 0x847   :  { %2608 = dma.done.wait [#allocation4], 256  }
 0x848   :  { %2609 = vsyncadd [#allocation4], 4294967040 }
 0x849   :  { %2610 = dma.done.wait [#allocation13], 256  }
 0x84a   :  { %2611 = vsyncadd [#allocation13], 4294967040 }
 0x84b   :  { %1998 = vsyncpa [#allocation3], 1 }
 0x84c   :  { %1999 = vsyncpa [#allocation6], 1 }
 0x84d   :  { %2000 = vsyncpa [#allocation9], 1 }
 0x84e   :  { %2001 = vsyncpa [#allocation4], 1 }
 0x84f   :  { %2002 = vsyncpa [#allocation13], 1 }

</bundles_post_ra>
